<compile_context>
chip_gen: v5e
topology: v5e:2x2
jax: 0.10.0
libtpu: 0.0.40
codegen_flags: <defaults>
</compile_context>

<pallas_src>
import jax
import jax.numpy as jnp
from jax.experimental import pallas as pl
from jax.experimental.pallas import tpu as pltpu


def _stsgcn_kernel(spa_adj_ref, tem_adj_ref, spa_x_ref, tem_x_ref,
                   w_st0_ref, w_st1_ref, w_ts0_ref, w_ts1_ref, alpha_ref,
                   o_st_ref, o_ts_ref, scr_ref):
    """Fused 2x(two-layer GCN) for one head.

    Per-head (head dim squeezed by the BlockSpecs) shapes:
      spa_adj (T, N, N)   tem_adj (N, T, T)
      spa_x   (T, N, F)   tem_x   (N, T, F)
      w_*     (F, E) / (E, E)   pre-transposed so that  x @ w == Linear(x)
      alpha   (4,) f32 in SMEM: PReLU slopes [st0, st1, ts0, ts1]
      o_st    (N, T, E)   o_ts (T, N, E)
      scr     (T*N, E) f32 VMEM scratch: layer-1 activations stored so row
              l*M1 + m  <->  h[l, m, :]  (i.e. already in layer-2 gather order).
    """

    def prelu(y, a):
        return jnp.where(y >= 0, y, a * y)

    def branch(adj1_ref, x_ref, w0_ref, a0, adj2_ref, w1_ref, a1, out_ref):
        L1, M1, _ = x_ref.shape

        # ---- layer 1: adjacency aggregation as ONE batched matmul over L1 ----
        ax = jnp.einsum('lmn,lnf->lmf', adj1_ref[...], x_ref[...],
                        preferred_element_type=jnp.float32)         # (L1, M1, F)

        # Weight projection + PReLU.  Rows are stashed in the VMEM scratch in
        # the (2,1,0,3)-permuted order so layer 2 reads them with plain strided
        # loads -- the inter-layer permute never round-trips through HBM and no
        # in-kernel transpose op is needed.
        w0 = w0_ref[...]
        for l in range(L1):                                          # static unroll
            h_l = prelu(jnp.dot(ax[l], w0,
                                preferred_element_type=jnp.float32), a0)
            scr_ref[pl.ds(l * M1, M1), :] = h_l                      # rows l*M1+m

        # ---- layer 2: one small matmul chain per node m of the second graph --
        w1 = w1_ref[...]
        for m in range(M1):                                          # static unroll
            hp = scr_ref[pl.ds(m, L1, M1), :]                        # (L1, E)
            y = jnp.dot(adj2_ref[m], hp, preferred_element_type=jnp.float32)
            y = prelu(jnp.dot(y, w1, preferred_element_type=jnp.float32), a1)
            out_ref[m] = y.astype(out_ref.dtype)

    # spatial -> temporal branch
    branch(spa_adj_ref, spa_x_ref, w_st0_ref, alpha_ref[0],
           tem_adj_ref, w_st1_ref, alpha_ref[1], o_st_ref)
    # temporal -> spatial branch
    branch(tem_adj_ref, tem_x_ref, w_ts0_ref, alpha_ref[2],
           spa_adj_ref, w_ts1_ref, alpha_ref[3], o_ts_ref)


def sparse_graph_convolution_forward(graph, spa_adj, tem_adj, params):
    """Mirrors SparseGraphConvolution.forward (axis permutes included)."""
    graph = graph[:, :, :, 1:]                           # drop first feature
    spa_graph = jnp.transpose(graph, (1, 0, 2, 3))       # [T, Bg, N, F]
    tem_graph = jnp.transpose(spa_graph, (2, 1, 0, 3))   # [N, Bg, T, F]

    T, Bg, N, F = spa_graph.shape
    Hs = spa_adj.shape[1]
    Ht = tem_adj.shape[1]
    E = params["st0_w"].shape[0]

    # broadcasted head/batch dim (torch.matmul leading-dim broadcast semantics)
    H = 1
    for s in (Bg, Hs, Ht):
        if s != 1:
            assert H in (1, s), "incompatible leading head/batch dims"
            H = s

    def idx4(size):
        # zero-copy broadcast of a size-1 head dim via the index_map
        if size == 1:
            return lambda h: (0, 0, 0, 0)
        return lambda h: (0, h, 0, 0)

    # nn.Linear weight is (out, in); transpose ONCE host-side so the kernel
    # never re-transposes a loop-invariant operand.
    w_st0 = params["st0_w"].T
    w_st1 = params["st1_w"].T
    w_ts0 = params["ts0_w"].T
    w_ts1 = params["ts1_w"].T
    alphas = jnp.asarray([params["st0_a"], params["st1_a"],
                          params["ts0_a"], params["ts1_a"]], jnp.float32)

    out_st, out_ts_raw = pl.pallas_call(
        _stsgcn_kernel,
        out_shape=(jax.ShapeDtypeStruct((N, H, T, E), jnp.float32),
                   jax.ShapeDtypeStruct((T, H, N, E), jnp.float32)),
        grid=(H,),
        in_specs=[
            pl.BlockSpec((T, None, N, N), idx4(Hs)),              # spatial adjacency
            pl.BlockSpec((N, None, T, T), idx4(Ht)),              # temporal adjacency
            pl.BlockSpec((T, None, N, F), idx4(Bg)),              # spa_graph
            pl.BlockSpec((N, None, T, F), idx4(Bg)),              # tem_graph
            pl.BlockSpec((F, E), lambda h: (0, 0)),               # W_st0^T
            pl.BlockSpec((E, E), lambda h: (0, 0)),               # W_st1^T
            pl.BlockSpec((F, E), lambda h: (0, 0)),               # W_ts0^T
            pl.BlockSpec((E, E), lambda h: (0, 0)),               # W_ts1^T
            pl.BlockSpec(memory_space=pltpu.MemorySpace.SMEM),    # PReLU alphas
        ],
        out_specs=(
            pl.BlockSpec((N, None, T, E), lambda h: (0, h, 0, 0)),
            pl.BlockSpec((T, None, N, E), lambda h: (0, h, 0, 0)),
        ),
        scratch_shapes=[pltpu.VMEM((T * N, E), jnp.float32)],
        compiler_params=pltpu.CompilerParams(
            dimension_semantics=("parallel",)),
    )(spa_adj, tem_adj, spa_graph, tem_graph, w_st0, w_st1, w_ts0, w_ts1, alphas)

    # Module return: (spatial->temporal feats, permuted temporal->spatial feats)
    # TODO(synk): E=16 (<128 lanes) keeps the stores masked; a lane-dense (M*E)
    # packing is possible but irrelevant at single-grid-step scale.
    return out_st, jnp.transpose(out_ts_raw, (2, 1, 0, 3))


def init_params(key, in_dims=16, embedding_dims=16):
    ks = jax.random.split(key, 4)

    def linear_w(k, fan_in, fan_out):
        bound = 1.0 / jnp.sqrt(jnp.float32(fan_in))
        return jax.random.uniform(k, (fan_out, fan_in), jnp.float32, -bound, bound)

    return {
        # spatial_temporal_sparse_gcn[0], [1]
        "st0_w": linear_w(ks[0], in_dims, embedding_dims), "st0_a": 0.25,
        "st1_w": linear_w(ks[1], embedding_dims, embedding_dims), "st1_a": 0.25,
        # temporal_spatial_sparse_gcn[0], [1]
        "ts0_w": linear_w(ks[2], in_dims, embedding_dims), "ts0_a": 0.25,
        "ts1_w": linear_w(ks[3], embedding_dims, embedding_dims), "ts1_a": 0.25,
    }


# ------------------------- pure-JAX reference -------------------------------
def _gcn_ref(adjacency, x, weight, alpha):
    y = jnp.matmul(adjacency, x) @ weight.T
    return jnp.where(y >= 0, y, alpha * y)


def _reference(graph, spa_adj, tem_adj, params):
    graph = graph[:, :, :, 1:]
    spa_graph = jnp.transpose(graph, (1, 0, 2, 3))
    tem_graph = jnp.transpose(spa_graph, (2, 1, 0, 3))
    gs = _gcn_ref(spa_adj, spa_graph, params["st0_w"], params["st0_a"])
    gs = jnp.transpose(gs, (2, 1, 0, 3))
    gst = _gcn_ref(tem_adj, gs, params["st1_w"], params["st1_a"])
    gt = _gcn_ref(tem_adj, tem_graph, params["ts0_w"], params["ts0_a"])
    gt = jnp.transpose(gt, (2, 1, 0, 3))
    gts = _gcn_ref(spa_adj, gt, params["ts1_w"], params["ts1_a"])
    return gst, jnp.transpose(gts, (2, 1, 0, 3))


if __name__ == "__main__":
    # TODO(synk): only the SparseGraphConvolution (stsgcn) hot path is
    # kernelized; the surrounding TrajectoryModel ops (attention, asymmetric
    # conv mask stack, TCN/Linear head) remain ordinary XLA ops.
    key = jax.random.PRNGKey(0)
    B, T, N, H = 1, 8, 4, 4       # batch=1, obs_len=8, 4 nodes, 4 heads
    in_dims, emb = 16, 16         # module defaults; graph carries in_dims+1 feats

    kg, ks, kt, kp = jax.random.split(key, 4)
    graph = jax.random.normal(kg, (B, T, N, in_dims + 1), jnp.float32)

    # spatial adjacency: [T, H, N, N], row-normalized
    spa_adj = jax.nn.softmax(
        jax.random.normal(ks, (T, H, N, N), jnp.float32), axis=-1)
    # temporal adjacency: [N, H, T, T], causal lower-triangular, row-normalized
    tem_raw = jax.random.normal(kt, (N, H, T, T), jnp.float32)
    tril = jnp.tril(jnp.ones((T, T), jnp.float32))
    tem_adj = jax.nn.softmax(jnp.where(tril > 0, tem_raw, -1e9), axis=-1)

    params = init_params(kp, in_dims, emb)

    fwd = jax.jit(sparse_graph_convolution_forward)
    out_st, out_ts = fwd(graph, spa_adj, tem_adj, params)
    jax.block_until_ready((out_st, out_ts))

    ref_st, ref_ts = _reference(graph, spa_adj, tem_adj, params)
    assert out_st.shape == (N, H, T, emb) and out_ts.shape == (N, H, T, emb)
    assert jnp.allclose(out_st, ref_st, atol=1e-4, rtol=1e-4)
    assert jnp.allclose(out_ts, ref_ts, atol=1e-4, rtol=1e-4)
    print("KERNEL_OK")
</pallas_src>

<mosaic_0001>
module attributes {stable_mosaic.version = 11 : i64} {
  func.func @_stsgcn_kernel(%arg0: i32, %arg1: memref<8x1x4x4xf32, #tpu.memory_space<vmem>>, %arg2: memref<4x1x8x8xf32, #tpu.memory_space<vmem>>, %arg3: memref<8x1x4x16xf32, #tpu.memory_space<vmem>>, %arg4: memref<4x1x8x16xf32, #tpu.memory_space<vmem>>, %arg5: memref<16x16xf32, #tpu.memory_space<vmem>>, %arg6: memref<16x16xf32, #tpu.memory_space<vmem>>, %arg7: memref<16x16xf32, #tpu.memory_space<vmem>>, %arg8: memref<16x16xf32, #tpu.memory_space<vmem>>, %arg9: memref<4xf32, #tpu.memory_space<smem>>, %arg10: memref<4x1x8x16xf32, #tpu.memory_space<vmem>>, %arg11: memref<8x1x4x16xf32, #tpu.memory_space<vmem>>, %arg12: memref<32x16xf32, #tpu.memory_space<vmem>>) attributes {dimension_semantics = [#tpu.dimension_semantics<parallel>], iteration_bounds = array<i64: 4>, scalar_prefetch = 0 : i64, scratch_operands = 1 : i64, tpu.core_type = #tpu.core_type<tc>, window_params = [{transform_indices = @transform_0, window_bounds = array<i64: 8, 1, 4, 4>}, {transform_indices = @transform_1, window_bounds = array<i64: 4, 1, 8, 8>}, {pipeline_mode = #tpu.pipeline_mode<synchronous>, transform_indices = @transform_2, window_bounds = array<i64: 8, 1, 4, 16>}, {pipeline_mode = #tpu.pipeline_mode<synchronous>, transform_indices = @transform_3, window_bounds = array<i64: 4, 1, 8, 16>}, {pipeline_mode = #tpu.pipeline_mode<synchronous>, transform_indices = @transform_4, window_bounds = array<i64: 16, 16>}, {pipeline_mode = #tpu.pipeline_mode<synchronous>, transform_indices = @transform_5, window_bounds = array<i64: 16, 16>}, {pipeline_mode = #tpu.pipeline_mode<synchronous>, transform_indices = @transform_6, window_bounds = array<i64: 16, 16>}, {pipeline_mode = #tpu.pipeline_mode<synchronous>, transform_indices = @transform_7, window_bounds = array<i64: 16, 16>}, {transform_indices = @transform_8, window_bounds = array<i64: 4>}, {transform_indices = @transform_9, window_bounds = array<i64: 4, 1, 8, 16>}, {transform_indices = @transform_10, window_bounds = array<i64: 8, 1, 4, 16>}]} {
    %c0 = arith.constant 0 : index
    %0 = memref.load %arg9[%c0] : memref<4xf32, #tpu.memory_space<smem>>
    %c1 = arith.constant 1 : index
    %1 = memref.load %arg9[%c1] : memref<4xf32, #tpu.memory_space<smem>>
    %c0_0 = arith.constant 0 : index
    %c0_1 = arith.constant 0 : index
    %c0_2 = arith.constant 0 : index
    %c0_3 = arith.constant 0 : index
    %2 = vector.load %arg1[%c0_0, %c0_1, %c0_2, %c0_3] : memref<8x1x4x4xf32, #tpu.memory_space<vmem>>, vector<8x1x4x4xf32>
    %3 = vector.shape_cast %2 : vector<8x1x4x4xf32> to vector<8x4x4xf32>
    %c0_4 = arith.constant 0 : index
    %c0_5 = arith.constant 0 : index
    %c0_6 = arith.constant 0 : index
    %c0_7 = arith.constant 0 : index
    %4 = vector.load %arg3[%c0_4, %c0_5, %c0_6, %c0_7] : memref<8x1x4x16xf32, #tpu.memory_space<vmem>>, vector<8x1x4x16xf32>
    %5 = vector.shape_cast %4 : vector<8x1x4x16xf32> to vector<8x4x16xf32>
    "tpu.trace_start"() <{level = 10 : i32, message = "lmn,lnf->lmf"}> : () -> ()
    %cst = arith.constant dense<0.000000e+00> : vector<8x4x16xf32>
    %6 = tpu.matmul %3, %5, %cst {dimension_numbers = #tpu.dot_dimension_numbers<[2], [1], [1], [2], [0, 0, 0, 1, 1, 2], [0], [0]>} : vector<8x4x4xf32>, vector<8x4x16xf32>, vector<8x4x16xf32> -> vector<8x4x16xf32>
    "tpu.trace_stop"() : () -> ()
    %c0_8 = arith.constant 0 : index
    %c0_9 = arith.constant 0 : index
    %7 = vector.load %arg5[%c0_8, %c0_9] : memref<16x16xf32, #tpu.memory_space<vmem>>, vector<16x16xf32>
    %8 = vector.extract_strided_slice %6 {offsets = [0, 0, 0], sizes = [1, 4, 16], strides = [1, 1, 1]} : vector<8x4x16xf32> to vector<1x4x16xf32>
    %9 = vector.shape_cast %8 : vector<1x4x16xf32> to vector<4x16xf32>
    %cst_10 = arith.constant dense<0.000000e+00> : vector<4x16xf32>
    %10 = tpu.matmul %9, %7, %cst_10 {dimension_numbers = #tpu.dot_dimension_numbers<[1], [0], [0], [1], [0, 0, 1, 1], [], []>} : vector<4x16xf32>, vector<16x16xf32>, vector<4x16xf32> -> vector<4x16xf32>
    %cst_11 = arith.constant 0.000000e+00 : f32
    %11 = vector.broadcast %cst_11 : f32 to vector<4x16xf32>
    %12 = arith.cmpf oge, %10, %11 : vector<4x16xf32>
    %13 = vector.broadcast %0 : f32 to vector<4x16xf32>
    %14 = arith.mulf %13, %10 : vector<4x16xf32>
    %15 = arith.select %12, %10, %14 : vector<4x16xi1>, vector<4x16xf32>
    %c0_12 = arith.constant 0 : index
    %c0_13 = arith.constant 0 : index
    %16 = vector.load %arg12[%c0_12, %c0_13] : memref<32x16xf32, #tpu.memory_space<vmem>>, vector<4x16xf32>
    tpu.vector_store %arg12[%c0_12, %c0_13], %15 {strides = array<i32>} : memref<32x16xf32, #tpu.memory_space<vmem>>, vector<4x16xf32>,
    %17 = vector.extract_strided_slice %6 {offsets = [1, 0, 0], sizes = [1, 4, 16], strides = [1, 1, 1]} : vector<8x4x16xf32> to vector<1x4x16xf32>
    %18 = vector.shape_cast %17 : vector<1x4x16xf32> to vector<4x16xf32>
    %cst_14 = arith.constant dense<0.000000e+00> : vector<4x16xf32>
    %19 = tpu.matmul %18, %7, %cst_14 {dimension_numbers = #tpu.dot_dimension_numbers<[1], [0], [0], [1], [0, 0, 1, 1], [], []>} : vector<4x16xf32>, vector<16x16xf32>, vector<4x16xf32> -> vector<4x16xf32>
    %cst_15 = arith.constant 0.000000e+00 : f32
    %20 = vector.broadcast %cst_15 : f32 to vector<4x16xf32>
    %21 = arith.cmpf oge, %19, %20 : vector<4x16xf32>
    %22 = vector.broadcast %0 : f32 to vector<4x16xf32>
    %23 = arith.mulf %22, %19 : vector<4x16xf32>
    %24 = arith.select %21, %19, %23 : vector<4x16xi1>, vector<4x16xf32>
    %c4 = arith.constant 4 : index
    %c0_16 = arith.constant 0 : index
    %25 = vector.load %arg12[%c4, %c0_16] : memref<32x16xf32, #tpu.memory_space<vmem>>, vector<4x16xf32>
    tpu.vector_store %arg12[%c4, %c0_16], %24 {strides = array<i32>} : memref<32x16xf32, #tpu.memory_space<vmem>>, vector<4x16xf32>,
    %26 = vector.extract_strided_slice %6 {offsets = [2, 0, 0], sizes = [1, 4, 16], strides = [1, 1, 1]} : vector<8x4x16xf32> to vector<1x4x16xf32>
    %27 = vector.shape_cast %26 : vector<1x4x16xf32> to vector<4x16xf32>
    %cst_17 = arith.constant dense<0.000000e+00> : vector<4x16xf32>
    %28 = tpu.matmul %27, %7, %cst_17 {dimension_numbers = #tpu.dot_dimension_numbers<[1], [0], [0], [1], [0, 0, 1, 1], [], []>} : vector<4x16xf32>, vector<16x16xf32>, vector<4x16xf32> -> vector<4x16xf32>
    %cst_18 = arith.constant 0.000000e+00 : f32
    %29 = vector.broadcast %cst_18 : f32 to vector<4x16xf32>
    %30 = arith.cmpf oge, %28, %29 : vector<4x16xf32>
    %31 = vector.broadcast %0 : f32 to vector<4x16xf32>
    %32 = arith.mulf %31, %28 : vector<4x16xf32>
    %33 = arith.select %30, %28, %32 : vector<4x16xi1>, vector<4x16xf32>
    %c8 = arith.constant 8 : index
    %c0_19 = arith.constant 0 : index
    %34 = vector.load %arg12[%c8, %c0_19] : memref<32x16xf32, #tpu.memory_space<vmem>>, vector<4x16xf32>
    tpu.vector_store %arg12[%c8, %c0_19], %33 {strides = array<i32>} : memref<32x16xf32, #tpu.memory_space<vmem>>, vector<4x16xf32>,
    %35 = vector.extract_strided_slice %6 {offsets = [3, 0, 0], sizes = [1, 4, 16], strides = [1, 1, 1]} : vector<8x4x16xf32> to vector<1x4x16xf32>
    %36 = vector.shape_cast %35 : vector<1x4x16xf32> to vector<4x16xf32>
    %cst_20 = arith.constant dense<0.000000e+00> : vector<4x16xf32>
    %37 = tpu.matmul %36, %7, %cst_20 {dimension_numbers = #tpu.dot_dimension_numbers<[1], [0], [0], [1], [0, 0, 1, 1], [], []>} : vector<4x16xf32>, vector<16x16xf32>, vector<4x16xf32> -> vector<4x16xf32>
    %cst_21 = arith.constant 0.000000e+00 : f32
    %38 = vector.broadcast %cst_21 : f32 to vector<4x16xf32>
    %39 = arith.cmpf oge, %37, %38 : vector<4x16xf32>
    %40 = vector.broadcast %0 : f32 to vector<4x16xf32>
    %41 = arith.mulf %40, %37 : vector<4x16xf32>
    %42 = arith.select %39, %37, %41 : vector<4x16xi1>, vector<4x16xf32>
    %c12 = arith.constant 12 : index
    %c0_22 = arith.constant 0 : index
    %43 = vector.load %arg12[%c12, %c0_22] : memref<32x16xf32, #tpu.memory_space<vmem>>, vector<4x16xf32>
    tpu.vector_store %arg12[%c12, %c0_22], %42 {strides = array<i32>} : memref<32x16xf32, #tpu.memory_space<vmem>>, vector<4x16xf32>,
    %44 = vector.extract_strided_slice %6 {offsets = [4, 0, 0], sizes = [1, 4, 16], strides = [1, 1, 1]} : vector<8x4x16xf32> to vector<1x4x16xf32>
    %45 = vector.shape_cast %44 : vector<1x4x16xf32> to vector<4x16xf32>
    %cst_23 = arith.constant dense<0.000000e+00> : vector<4x16xf32>
    %46 = tpu.matmul %45, %7, %cst_23 {dimension_numbers = #tpu.dot_dimension_numbers<[1], [0], [0], [1], [0, 0, 1, 1], [], []>} : vector<4x16xf32>, vector<16x16xf32>, vector<4x16xf32> -> vector<4x16xf32>
    %cst_24 = arith.constant 0.000000e+00 : f32
    %47 = vector.broadcast %cst_24 : f32 to vector<4x16xf32>
    %48 = arith.cmpf oge, %46, %47 : vector<4x16xf32>
    %49 = vector.broadcast %0 : f32 to vector<4x16xf32>
    %50 = arith.mulf %49, %46 : vector<4x16xf32>
    %51 = arith.select %48, %46, %50 : vector<4x16xi1>, vector<4x16xf32>
    %c16 = arith.constant 16 : index
    %c0_25 = arith.constant 0 : index
    %52 = vector.load %arg12[%c16, %c0_25] : memref<32x16xf32, #tpu.memory_space<vmem>>, vector<4x16xf32>
    tpu.vector_store %arg12[%c16, %c0_25], %51 {strides = array<i32>} : memref<32x16xf32, #tpu.memory_space<vmem>>, vector<4x16xf32>,
    %53 = vector.extract_strided_slice %6 {offsets = [5, 0, 0], sizes = [1, 4, 16], strides = [1, 1, 1]} : vector<8x4x16xf32> to vector<1x4x16xf32>
    %54 = vector.shape_cast %53 : vector<1x4x16xf32> to vector<4x16xf32>
    %cst_26 = arith.constant dense<0.000000e+00> : vector<4x16xf32>
    %55 = tpu.matmul %54, %7, %cst_26 {dimension_numbers = #tpu.dot_dimension_numbers<[1], [0], [0], [1], [0, 0, 1, 1], [], []>} : vector<4x16xf32>, vector<16x16xf32>, vector<4x16xf32> -> vector<4x16xf32>
    %cst_27 = arith.constant 0.000000e+00 : f32
    %56 = vector.broadcast %cst_27 : f32 to vector<4x16xf32>
    %57 = arith.cmpf oge, %55, %56 : vector<4x16xf32>
    %58 = vector.broadcast %0 : f32 to vector<4x16xf32>
    %59 = arith.mulf %58, %55 : vector<4x16xf32>
    %60 = arith.select %57, %55, %59 : vector<4x16xi1>, vector<4x16xf32>
    %c20 = arith.constant 20 : index
    %c0_28 = arith.constant 0 : index
    %61 = vector.load %arg12[%c20, %c0_28] : memref<32x16xf32, #tpu.memory_space<vmem>>, vector<4x16xf32>
    tpu.vector_store %arg12[%c20, %c0_28], %60 {strides = array<i32>} : memref<32x16xf32, #tpu.memory_space<vmem>>, vector<4x16xf32>,
    %62 = vector.extract_strided_slice %6 {offsets = [6, 0, 0], sizes = [1, 4, 16], strides = [1, 1, 1]} : vector<8x4x16xf32> to vector<1x4x16xf32>
    %63 = vector.shape_cast %62 : vector<1x4x16xf32> to vector<4x16xf32>
    %cst_29 = arith.constant dense<0.000000e+00> : vector<4x16xf32>
    %64 = tpu.matmul %63, %7, %cst_29 {dimension_numbers = #tpu.dot_dimension_numbers<[1], [0], [0], [1], [0, 0, 1, 1], [], []>} : vector<4x16xf32>, vector<16x16xf32>, vector<4x16xf32> -> vector<4x16xf32>
    %cst_30 = arith.constant 0.000000e+00 : f32
    %65 = vector.broadcast %cst_30 : f32 to vector<4x16xf32>
    %66 = arith.cmpf oge, %64, %65 : vector<4x16xf32>
    %67 = vector.broadcast %0 : f32 to vector<4x16xf32>
    %68 = arith.mulf %67, %64 : vector<4x16xf32>
    %69 = arith.select %66, %64, %68 : vector<4x16xi1>, vector<4x16xf32>
    %c24 = arith.constant 24 : index
    %c0_31 = arith.constant 0 : index
    %70 = vector.load %arg12[%c24, %c0_31] : memref<32x16xf32, #tpu.memory_space<vmem>>, vector<4x16xf32>
    tpu.vector_store %arg12[%c24, %c0_31], %69 {strides = array<i32>} : memref<32x16xf32, #tpu.memory_space<vmem>>, vector<4x16xf32>,
    %71 = vector.extract_strided_slice %6 {offsets = [7, 0, 0], sizes = [1, 4, 16], strides = [1, 1, 1]} : vector<8x4x16xf32> to vector<1x4x16xf32>
    %72 = vector.shape_cast %71 : vector<1x4x16xf32> to vector<4x16xf32>
    %cst_32 = arith.constant dense<0.000000e+00> : vector<4x16xf32>
    %73 = tpu.matmul %72, %7, %cst_32 {dimension_numbers = #tpu.dot_dimension_numbers<[1], [0], [0], [1], [0, 0, 1, 1], [], []>} : vector<4x16xf32>, vector<16x16xf32>, vector<4x16xf32> -> vector<4x16xf32>
    %cst_33 = arith.constant 0.000000e+00 : f32
    %74 = vector.broadcast %cst_33 : f32 to vector<4x16xf32>
    %75 = arith.cmpf oge, %73, %74 : vector<4x16xf32>
    %76 = vector.broadcast %0 : f32 to vector<4x16xf32>
    %77 = arith.mulf %76, %73 : vector<4x16xf32>
    %78 = arith.select %75, %73, %77 : vector<4x16xi1>, vector<4x16xf32>
    %c28 = arith.constant 28 : index
    %c0_34 = arith.constant 0 : index
    %79 = vector.load %arg12[%c28, %c0_34] : memref<32x16xf32, #tpu.memory_space<vmem>>, vector<4x16xf32>
    tpu.vector_store %arg12[%c28, %c0_34], %78 {strides = array<i32>} : memref<32x16xf32, #tpu.memory_space<vmem>>, vector<4x16xf32>,
    %c0_35 = arith.constant 0 : index
    %c0_36 = arith.constant 0 : index
    %80 = vector.load %arg6[%c0_35, %c0_36] : memref<16x16xf32, #tpu.memory_space<vmem>>, vector<16x16xf32>
    %c0_37 = arith.constant 0 : index
    %c0_38 = arith.constant 0 : index
    %81 = tpu.strided_load %arg12[%c0_37, %c0_38] {strides = array<i32: 4, 1>} : memref<32x16xf32, #tpu.memory_space<vmem>>, vector<8x16xf32>
    %c0_39 = arith.constant 0 : index
    %c0_40 = arith.constant 0 : index
    %c0_41 = arith.constant 0 : index
    %c0_42 = arith.constant 0 : index
    %82 = vector.load %arg2[%c0_39, %c0_40, %c0_41, %c0_42] : memref<4x1x8x8xf32, #tpu.memory_space<vmem>>, vector<1x1x8x8xf32>
    %83 = vector.shape_cast %82 : vector<1x1x8x8xf32> to vector<8x8xf32>
    %cst_43 = arith.constant dense<0.000000e+00> : vector<8x16xf32>
    %84 = tpu.matmul %83, %81, %cst_43 {dimension_numbers = #tpu.dot_dimension_numbers<[1], [0], [0], [1], [0, 0, 1, 1], [], []>} : vector<8x8xf32>, vector<8x16xf32>, vector<8x16xf32> -> vector<8x16xf32>
    %cst_44 = arith.constant dense<0.000000e+00> : vector<8x16xf32>
    %85 = tpu.matmul %84, %80, %cst_44 {dimension_numbers = #tpu.dot_dimension_numbers<[1], [0], [0], [1], [0, 0, 1, 1], [], []>} : vector<8x16xf32>, vector<16x16xf32>, vector<8x16xf32> -> vector<8x16xf32>
    %cst_45 = arith.constant 0.000000e+00 : f32
    %86 = vector.broadcast %cst_45 : f32 to vector<8x16xf32>
    %87 = arith.cmpf oge, %85, %86 : vector<8x16xf32>
    %88 = vector.broadcast %1 : f32 to vector<8x16xf32>
    %89 = arith.mulf %88, %85 : vector<8x16xf32>
    %90 = arith.select %87, %85, %89 : vector<8x16xi1>, vector<8x16xf32>
    %c0_46 = arith.constant 0 : index
    %c0_47 = arith.constant 0 : index
    %c0_48 = arith.constant 0 : index
    %c0_49 = arith.constant 0 : index
    %91 = vector.load %arg10[%c0_46, %c0_47, %c0_48, %c0_49] : memref<4x1x8x16xf32, #tpu.memory_space<vmem>>, vector<1x1x8x16xf32>
    %92 = vector.shape_cast %91 : vector<1x1x8x16xf32> to vector<8x16xf32>
    %93 = vector.shape_cast %90 : vector<8x16xf32> to vector<1x1x8x16xf32>
    tpu.vector_store %arg10[%c0_46, %c0_47, %c0_48, %c0_49], %93 {strides = array<i32>} : memref<4x1x8x16xf32, #tpu.memory_space<vmem>>, vector<1x1x8x16xf32>,
    %c1_50 = arith.constant 1 : index
    %c0_51 = arith.constant 0 : index
    %94 = tpu.strided_load %arg12[%c1_50, %c0_51] {strides = array<i32: 4, 1>} : memref<32x16xf32, #tpu.memory_space<vmem>>, vector<8x16xf32>
    %c1_52 = arith.constant 1 : index
    %c0_53 = arith.constant 0 : index
    %c0_54 = arith.constant 0 : index
    %c0_55 = arith.constant 0 : index
    %95 = vector.load %arg2[%c1_52, %c0_53, %c0_54, %c0_55] : memref<4x1x8x8xf32, #tpu.memory_space<vmem>>, vector<1x1x8x8xf32>
    %96 = vector.shape_cast %95 : vector<1x1x8x8xf32> to vector<8x8xf32>
    %cst_56 = arith.constant dense<0.000000e+00> : vector<8x16xf32>
    %97 = tpu.matmul %96, %94, %cst_56 {dimension_numbers = #tpu.dot_dimension_numbers<[1], [0], [0], [1], [0, 0, 1, 1], [], []>} : vector<8x8xf32>, vector<8x16xf32>, vector<8x16xf32> -> vector<8x16xf32>
    %cst_57 = arith.constant dense<0.000000e+00> : vector<8x16xf32>
    %98 = tpu.matmul %97, %80, %cst_57 {dimension_numbers = #tpu.dot_dimension_numbers<[1], [0], [0], [1], [0, 0, 1, 1], [], []>} : vector<8x16xf32>, vector<16x16xf32>, vector<8x16xf32> -> vector<8x16xf32>
    %cst_58 = arith.constant 0.000000e+00 : f32
    %99 = vector.broadcast %cst_58 : f32 to vector<8x16xf32>
    %100 = arith.cmpf oge, %98, %99 : vector<8x16xf32>
    %101 = vector.broadcast %1 : f32 to vector<8x16xf32>
    %102 = arith.mulf %101, %98 : vector<8x16xf32>
    %103 = arith.select %100, %98, %102 : vector<8x16xi1>, vector<8x16xf32>
    %c1_59 = arith.constant 1 : index
    %c0_60 = arith.constant 0 : index
    %c0_61 = arith.constant 0 : index
    %c0_62 = arith.constant 0 : index
    %104 = vector.load %arg10[%c1_59, %c0_60, %c0_61, %c0_62] : memref<4x1x8x16xf32, #tpu.memory_space<vmem>>, vector<1x1x8x16xf32>
    %105 = vector.shape_cast %104 : vector<1x1x8x16xf32> to vector<8x16xf32>
    %106 = vector.shape_cast %103 : vector<8x16xf32> to vector<1x1x8x16xf32>
    tpu.vector_store %arg10[%c1_59, %c0_60, %c0_61, %c0_62], %106 {strides = array<i32>} : memref<4x1x8x16xf32, #tpu.memory_space<vmem>>, vector<1x1x8x16xf32>,
    %c2 = arith.constant 2 : index
    %c0_63 = arith.constant 0 : index
    %107 = tpu.strided_load %arg12[%c2, %c0_63] {strides = array<i32: 4, 1>} : memref<32x16xf32, #tpu.memory_space<vmem>>, vector<8x16xf32>
    %c2_64 = arith.constant 2 : index
    %c0_65 = arith.constant 0 : index
    %c0_66 = arith.constant 0 : index
    %c0_67 = arith.constant 0 : index
    %108 = vector.load %arg2[%c2_64, %c0_65, %c0_66, %c0_67] : memref<4x1x8x8xf32, #tpu.memory_space<vmem>>, vector<1x1x8x8xf32>
    %109 = vector.shape_cast %108 : vector<1x1x8x8xf32> to vector<8x8xf32>
    %cst_68 = arith.constant dense<0.000000e+00> : vector<8x16xf32>
    %110 = tpu.matmul %109, %107, %cst_68 {dimension_numbers = #tpu.dot_dimension_numbers<[1], [0], [0], [1], [0, 0, 1, 1], [], []>} : vector<8x8xf32>, vector<8x16xf32>, vector<8x16xf32> -> vector<8x16xf32>
    %cst_69 = arith.constant dense<0.000000e+00> : vector<8x16xf32>
    %111 = tpu.matmul %110, %80, %cst_69 {dimension_numbers = #tpu.dot_dimension_numbers<[1], [0], [0], [1], [0, 0, 1, 1], [], []>} : vector<8x16xf32>, vector<16x16xf32>, vector<8x16xf32> -> vector<8x16xf32>
    %cst_70 = arith.constant 0.000000e+00 : f32
    %112 = vector.broadcast %cst_70 : f32 to vector<8x16xf32>
    %113 = arith.cmpf oge, %111, %112 : vector<8x16xf32>
    %114 = vector.broadcast %1 : f32 to vector<8x16xf32>
    %115 = arith.mulf %114, %111 : vector<8x16xf32>
    %116 = arith.select %113, %111, %115 : vector<8x16xi1>, vector<8x16xf32>
    %c2_71 = arith.constant 2 : index
    %c0_72 = arith.constant 0 : index
    %c0_73 = arith.constant 0 : index
    %c0_74 = arith.constant 0 : index
    %117 = vector.load %arg10[%c2_71, %c0_72, %c0_73, %c0_74] : memref<4x1x8x16xf32, #tpu.memory_space<vmem>>, vector<1x1x8x16xf32>
    %118 = vector.shape_cast %117 : vector<1x1x8x16xf32> to vector<8x16xf32>
    %119 = vector.shape_cast %116 : vector<8x16xf32> to vector<1x1x8x16xf32>
    tpu.vector_store %arg10[%c2_71, %c0_72, %c0_73, %c0_74], %119 {strides = array<i32>} : memref<4x1x8x16xf32, #tpu.memory_space<vmem>>, vector<1x1x8x16xf32>,
    %c3 = arith.constant 3 : index
    %c0_75 = arith.constant 0 : index
    %120 = tpu.strided_load %arg12[%c3, %c0_75] {strides = array<i32: 4, 1>} : memref<32x16xf32, #tpu.memory_space<vmem>>, vector<8x16xf32>
    %c3_76 = arith.constant 3 : index
    %c0_77 = arith.constant 0 : index
    %c0_78 = arith.constant 0 : index
    %c0_79 = arith.constant 0 : index
    %121 = vector.load %arg2[%c3_76, %c0_77, %c0_78, %c0_79] : memref<4x1x8x8xf32, #tpu.memory_space<vmem>>, vector<1x1x8x8xf32>
    %122 = vector.shape_cast %121 : vector<1x1x8x8xf32> to vector<8x8xf32>
    %cst_80 = arith.constant dense<0.000000e+00> : vector<8x16xf32>
    %123 = tpu.matmul %122, %120, %cst_80 {dimension_numbers = #tpu.dot_dimension_numbers<[1], [0], [0], [1], [0, 0, 1, 1], [], []>} : vector<8x8xf32>, vector<8x16xf32>, vector<8x16xf32> -> vector<8x16xf32>
    %cst_81 = arith.constant dense<0.000000e+00> : vector<8x16xf32>
    %124 = tpu.matmul %123, %80, %cst_81 {dimension_numbers = #tpu.dot_dimension_numbers<[1], [0], [0], [1], [0, 0, 1, 1], [], []>} : vector<8x16xf32>, vector<16x16xf32>, vector<8x16xf32> -> vector<8x16xf32>
    %cst_82 = arith.constant 0.000000e+00 : f32
    %125 = vector.broadcast %cst_82 : f32 to vector<8x16xf32>
    %126 = arith.cmpf oge, %124, %125 : vector<8x16xf32>
    %127 = vector.broadcast %1 : f32 to vector<8x16xf32>
    %128 = arith.mulf %127, %124 : vector<8x16xf32>
    %129 = arith.select %126, %124, %128 : vector<8x16xi1>, vector<8x16xf32>
    %c3_83 = arith.constant 3 : index
    %c0_84 = arith.constant 0 : index
    %c0_85 = arith.constant 0 : index
    %c0_86 = arith.constant 0 : index
    %130 = vector.load %arg10[%c3_83, %c0_84, %c0_85, %c0_86] : memref<4x1x8x16xf32, #tpu.memory_space<vmem>>, vector<1x1x8x16xf32>
    %131 = vector.shape_cast %130 : vector<1x1x8x16xf32> to vector<8x16xf32>
    %132 = vector.shape_cast %129 : vector<8x16xf32> to vector<1x1x8x16xf32>
    tpu.vector_store %arg10[%c3_83, %c0_84, %c0_85, %c0_86], %132 {strides = array<i32>} : memref<4x1x8x16xf32, #tpu.memory_space<vmem>>, vector<1x1x8x16xf32>,
    %c2_87 = arith.constant 2 : index
    %133 = memref.load %arg9[%c2_87] : memref<4xf32, #tpu.memory_space<smem>>
    %c3_88 = arith.constant 3 : index
    %134 = memref.load %arg9[%c3_88] : memref<4xf32, #tpu.memory_space<smem>>
    %c0_89 = arith.constant 0 : index
    %c0_90 = arith.constant 0 : index
    %c0_91 = arith.constant 0 : index
    %c0_92 = arith.constant 0 : index
    %135 = vector.load %arg2[%c0_89, %c0_90, %c0_91, %c0_92] : memref<4x1x8x8xf32, #tpu.memory_space<vmem>>, vector<4x1x8x8xf32>
    %136 = vector.shape_cast %135 : vector<4x1x8x8xf32> to vector<4x8x8xf32>
    %c0_93 = arith.constant 0 : index
    %c0_94 = arith.constant 0 : index
    %c0_95 = arith.constant 0 : index
    %c0_96 = arith.constant 0 : index
    %137 = vector.load %arg4[%c0_93, %c0_94, %c0_95, %c0_96] : memref<4x1x8x16xf32, #tpu.memory_space<vmem>>, vector<4x1x8x16xf32>
    %138 = vector.shape_cast %137 : vector<4x1x8x16xf32> to vector<4x8x16xf32>
    "tpu.trace_start"() <{level = 10 : i32, message = "lmn,lnf->lmf"}> : () -> ()
    %cst_97 = arith.constant dense<0.000000e+00> : vector<4x8x16xf32>
    %139 = tpu.matmul %136, %138, %cst_97 {dimension_numbers = #tpu.dot_dimension_numbers<[2], [1], [1], [2], [0, 0, 0, 1, 1, 2], [0], [0]>} : vector<4x8x8xf32>, vector<4x8x16xf32>, vector<4x8x16xf32> -> vector<4x8x16xf32>
    "tpu.trace_stop"() : () -> ()
    %c0_98 = arith.constant 0 : index
    %c0_99 = arith.constant 0 : index
    %140 = vector.load %arg7[%c0_98, %c0_99] : memref<16x16xf32, #tpu.memory_space<vmem>>, vector<16x16xf32>
    %141 = vector.extract_strided_slice %139 {offsets = [0, 0, 0], sizes = [1, 8, 16], strides = [1, 1, 1]} : vector<4x8x16xf32> to vector<1x8x16xf32>
    %142 = vector.shape_cast %141 : vector<1x8x16xf32> to vector<8x16xf32>
    %cst_100 = arith.constant dense<0.000000e+00> : vector<8x16xf32>
    %143 = tpu.matmul %142, %140, %cst_100 {dimension_numbers = #tpu.dot_dimension_numbers<[1], [0], [0], [1], [0, 0, 1, 1], [], []>} : vector<8x16xf32>, vector<16x16xf32>, vector<8x16xf32> -> vector<8x16xf32>
    %cst_101 = arith.constant 0.000000e+00 : f32
    %144 = vector.broadcast %cst_101 : f32 to vector<8x16xf32>
    %145 = arith.cmpf oge, %143, %144 : vector<8x16xf32>
    %146 = vector.broadcast %133 : f32 to vector<8x16xf32>
    %147 = arith.mulf %146, %143 : vector<8x16xf32>
    %148 = arith.select %145, %143, %147 : vector<8x16xi1>, vector<8x16xf32>
    %c0_102 = arith.constant 0 : index
    %c0_103 = arith.constant 0 : index
    %149 = vector.load %arg12[%c0_102, %c0_103] : memref<32x16xf32, #tpu.memory_space<vmem>>, vector<8x16xf32>
    tpu.vector_store %arg12[%c0_102, %c0_103], %148 {strides = array<i32>} : memref<32x16xf32, #tpu.memory_space<vmem>>, vector<8x16xf32>,
    %150 = vector.extract_strided_slice %139 {offsets = [1, 0, 0], sizes = [1, 8, 16], strides = [1, 1, 1]} : vector<4x8x16xf32> to vector<1x8x16xf32>
    %151 = vector.shape_cast %150 : vector<1x8x16xf32> to vector<8x16xf32>
    %cst_104 = arith.constant dense<0.000000e+00> : vector<8x16xf32>
    %152 = tpu.matmul %151, %140, %cst_104 {dimension_numbers = #tpu.dot_dimension_numbers<[1], [0], [0], [1], [0, 0, 1, 1], [], []>} : vector<8x16xf32>, vector<16x16xf32>, vector<8x16xf32> -> vector<8x16xf32>
    %cst_105 = arith.constant 0.000000e+00 : f32
    %153 = vector.broadcast %cst_105 : f32 to vector<8x16xf32>
    %154 = arith.cmpf oge, %152, %153 : vector<8x16xf32>
    %155 = vector.broadcast %133 : f32 to vector<8x16xf32>
    %156 = arith.mulf %155, %152 : vector<8x16xf32>
    %157 = arith.select %154, %152, %156 : vector<8x16xi1>, vector<8x16xf32>
    %c8_106 = arith.constant 8 : index
    %c0_107 = arith.constant 0 : index
    %158 = vector.load %arg12[%c8_106, %c0_107] : memref<32x16xf32, #tpu.memory_space<vmem>>, vector<8x16xf32>
    tpu.vector_store %arg12[%c8_106, %c0_107], %157 {strides = array<i32>} : memref<32x16xf32, #tpu.memory_space<vmem>>, vector<8x16xf32>,
    %159 = vector.extract_strided_slice %139 {offsets = [2, 0, 0], sizes = [1, 8, 16], strides = [1, 1, 1]} : vector<4x8x16xf32> to vector<1x8x16xf32>
    %160 = vector.shape_cast %159 : vector<1x8x16xf32> to vector<8x16xf32>
    %cst_108 = arith.constant dense<0.000000e+00> : vector<8x16xf32>
    %161 = tpu.matmul %160, %140, %cst_108 {dimension_numbers = #tpu.dot_dimension_numbers<[1], [0], [0], [1], [0, 0, 1, 1], [], []>} : vector<8x16xf32>, vector<16x16xf32>, vector<8x16xf32> -> vector<8x16xf32>
    %cst_109 = arith.constant 0.000000e+00 : f32
    %162 = vector.broadcast %cst_109 : f32 to vector<8x16xf32>
    %163 = arith.cmpf oge, %161, %162 : vector<8x16xf32>
    %164 = vector.broadcast %133 : f32 to vector<8x16xf32>
    %165 = arith.mulf %164, %161 : vector<8x16xf32>
    %166 = arith.select %163, %161, %165 : vector<8x16xi1>, vector<8x16xf32>
    %c16_110 = arith.constant 16 : index
    %c0_111 = arith.constant 0 : index
    %167 = vector.load %arg12[%c16_110, %c0_111] : memref<32x16xf32, #tpu.memory_space<vmem>>, vector<8x16xf32>
    tpu.vector_store %arg12[%c16_110, %c0_111], %166 {strides = array<i32>} : memref<32x16xf32, #tpu.memory_space<vmem>>, vector<8x16xf32>,
    %168 = vector.extract_strided_slice %139 {offsets = [3, 0, 0], sizes = [1, 8, 16], strides = [1, 1, 1]} : vector<4x8x16xf32> to vector<1x8x16xf32>
    %169 = vector.shape_cast %168 : vector<1x8x16xf32> to vector<8x16xf32>
    %cst_112 = arith.constant dense<0.000000e+00> : vector<8x16xf32>
    %170 = tpu.matmul %169, %140, %cst_112 {dimension_numbers = #tpu.dot_dimension_numbers<[1], [0], [0], [1], [0, 0, 1, 1], [], []>} : vector<8x16xf32>, vector<16x16xf32>, vector<8x16xf32> -> vector<8x16xf32>
    %cst_113 = arith.constant 0.000000e+00 : f32
    %171 = vector.broadcast %cst_113 : f32 to vector<8x16xf32>
    %172 = arith.cmpf oge, %170, %171 : vector<8x16xf32>
    %173 = vector.broadcast %133 : f32 to vector<8x16xf32>
    %174 = arith.mulf %173, %170 : vector<8x16xf32>
    %175 = arith.select %172, %170, %174 : vector<8x16xi1>, vector<8x16xf32>
    %c24_114 = arith.constant 24 : index
    %c0_115 = arith.constant 0 : index
    %176 = vector.load %arg12[%c24_114, %c0_115] : memref<32x16xf32, #tpu.memory_space<vmem>>, vector<8x16xf32>
    tpu.vector_store %arg12[%c24_114, %c0_115], %175 {strides = array<i32>} : memref<32x16xf32, #tpu.memory_space<vmem>>, vector<8x16xf32>,
    %c0_116 = arith.constant 0 : index
    %c0_117 = arith.constant 0 : index
    %177 = vector.load %arg8[%c0_116, %c0_117] : memref<16x16xf32, #tpu.memory_space<vmem>>, vector<16x16xf32>
    %c0_118 = arith.constant 0 : index
    %c0_119 = arith.constant 0 : index
    %178 = tpu.strided_load %arg12[%c0_118, %c0_119] {strides = array<i32: 8, 1>} : memref<32x16xf32, #tpu.memory_space<vmem>>, vector<4x16xf32>
    %c0_120 = arith.constant 0 : index
    %c0_121 = arith.constant 0 : index
    %c0_122 = arith.constant 0 : index
    %c0_123 = arith.constant 0 : index
    %179 = vector.load %arg1[%c0_120, %c0_121, %c0_122, %c0_123] : memref<8x1x4x4xf32, #tpu.memory_space<vmem>>, vector<1x1x4x4xf32>
    %180 = vector.shape_cast %179 : vector<1x1x4x4xf32> to vector<4x4xf32>
    %cst_124 = arith.constant dense<0.000000e+00> : vector<4x16xf32>
    %181 = tpu.matmul %180, %178, %cst_124 {dimension_numbers = #tpu.dot_dimension_numbers<[1], [0], [0], [1], [0, 0, 1, 1], [], []>} : vector<4x4xf32>, vector<4x16xf32>, vector<4x16xf32> -> vector<4x16xf32>
    %cst_125 = arith.constant dense<0.000000e+00> : vector<4x16xf32>
    %182 = tpu.matmul %181, %177, %cst_125 {dimension_numbers = #tpu.dot_dimension_numbers<[1], [0], [0], [1], [0, 0, 1, 1], [], []>} : vector<4x16xf32>, vector<16x16xf32>, vector<4x16xf32> -> vector<4x16xf32>
    %cst_126 = arith.constant 0.000000e+00 : f32
    %183 = vector.broadcast %cst_126 : f32 to vector<4x16xf32>
    %184 = arith.cmpf oge, %182, %183 : vector<4x16xf32>
    %185 = vector.broadcast %134 : f32 to vector<4x16xf32>
    %186 = arith.mulf %185, %182 : vector<4x16xf32>
    %187 = arith.select %184, %182, %186 : vector<4x16xi1>, vector<4x16xf32>
    %c0_127 = arith.constant 0 : index
    %c0_128 = arith.constant 0 : index
    %c0_129 = arith.constant 0 : index
    %c0_130 = arith.constant 0 : index
    %188 = vector.load %arg11[%c0_127, %c0_128, %c0_129, %c0_130] : memref<8x1x4x16xf32, #tpu.memory_space<vmem>>, vector<1x1x4x16xf32>
    %189 = vector.shape_cast %188 : vector<1x1x4x16xf32> to vector<4x16xf32>
    %190 = vector.shape_cast %187 : vector<4x16xf32> to vector<1x1x4x16xf32>
    tpu.vector_store %arg11[%c0_127, %c0_128, %c0_129, %c0_130], %190 {strides = array<i32>} : memref<8x1x4x16xf32, #tpu.memory_space<vmem>>, vector<1x1x4x16xf32>,
    %c1_131 = arith.constant 1 : index
    %c0_132 = arith.constant 0 : index
    %191 = tpu.strided_load %arg12[%c1_131, %c0_132] {strides = array<i32: 8, 1>} : memref<32x16xf32, #tpu.memory_space<vmem>>, vector<4x16xf32>
    %c1_133 = arith.constant 1 : index
    %c0_134 = arith.constant 0 : index
    %c0_135 = arith.constant 0 : index
    %c0_136 = arith.constant 0 : index
    %192 = vector.load %arg1[%c1_133, %c0_134, %c0_135, %c0_136] : memref<8x1x4x4xf32, #tpu.memory_space<vmem>>, vector<1x1x4x4xf32>
    %193 = vector.shape_cast %192 : vector<1x1x4x4xf32> to vector<4x4xf32>
    %cst_137 = arith.constant dense<0.000000e+00> : vector<4x16xf32>
    %194 = tpu.matmul %193, %191, %cst_137 {dimension_numbers = #tpu.dot_dimension_numbers<[1], [0], [0], [1], [0, 0, 1, 1], [], []>} : vector<4x4xf32>, vector<4x16xf32>, vector<4x16xf32> -> vector<4x16xf32>
    %cst_138 = arith.constant dense<0.000000e+00> : vector<4x16xf32>
    %195 = tpu.matmul %194, %177, %cst_138 {dimension_numbers = #tpu.dot_dimension_numbers<[1], [0], [0], [1], [0, 0, 1, 1], [], []>} : vector<4x16xf32>, vector<16x16xf32>, vector<4x16xf32> -> vector<4x16xf32>
    %cst_139 = arith.constant 0.000000e+00 : f32
    %196 = vector.broadcast %cst_139 : f32 to vector<4x16xf32>
    %197 = arith.cmpf oge, %195, %196 : vector<4x16xf32>
    %198 = vector.broadcast %134 : f32 to vector<4x16xf32>
    %199 = arith.mulf %198, %195 : vector<4x16xf32>
    %200 = arith.select %197, %195, %199 : vector<4x16xi1>, vector<4x16xf32>
    %c1_140 = arith.constant 1 : index
    %c0_141 = arith.constant 0 : index
    %c0_142 = arith.constant 0 : index
    %c0_143 = arith.constant 0 : index
    %201 = vector.load %arg11[%c1_140, %c0_141, %c0_142, %c0_143] : memref<8x1x4x16xf32, #tpu.memory_space<vmem>>, vector<1x1x4x16xf32>
    %202 = vector.shape_cast %201 : vector<1x1x4x16xf32> to vector<4x16xf32>
    %203 = vector.shape_cast %200 : vector<4x16xf32> to vector<1x1x4x16xf32>
    tpu.vector_store %arg11[%c1_140, %c0_141, %c0_142, %c0_143], %203 {strides = array<i32>} : memref<8x1x4x16xf32, #tpu.memory_space<vmem>>, vector<1x1x4x16xf32>,
    %c2_144 = arith.constant 2 : index
    %c0_145 = arith.constant 0 : index
    %204 = tpu.strided_load %arg12[%c2_144, %c0_145] {strides = array<i32: 8, 1>} : memref<32x16xf32, #tpu.memory_space<vmem>>, vector<4x16xf32>
    %c2_146 = arith.constant 2 : index
    %c0_147 = arith.constant 0 : index
    %c0_148 = arith.constant 0 : index
    %c0_149 = arith.constant 0 : index
    %205 = vector.load %arg1[%c2_146, %c0_147, %c0_148, %c0_149] : memref<8x1x4x4xf32, #tpu.memory_space<vmem>>, vector<1x1x4x4xf32>
    %206 = vector.shape_cast %205 : vector<1x1x4x4xf32> to vector<4x4xf32>
    %cst_150 = arith.constant dense<0.000000e+00> : vector<4x16xf32>
    %207 = tpu.matmul %206, %204, %cst_150 {dimension_numbers = #tpu.dot_dimension_numbers<[1], [0], [0], [1], [0, 0, 1, 1], [], []>} : vector<4x4xf32>, vector<4x16xf32>, vector<4x16xf32> -> vector<4x16xf32>
    %cst_151 = arith.constant dense<0.000000e+00> : vector<4x16xf32>
    %208 = tpu.matmul %207, %177, %cst_151 {dimension_numbers = #tpu.dot_dimension_numbers<[1], [0], [0], [1], [0, 0, 1, 1], [], []>} : vector<4x16xf32>, vector<16x16xf32>, vector<4x16xf32> -> vector<4x16xf32>
    %cst_152 = arith.constant 0.000000e+00 : f32
    %209 = vector.broadcast %cst_152 : f32 to vector<4x16xf32>
    %210 = arith.cmpf oge, %208, %209 : vector<4x16xf32>
    %211 = vector.broadcast %134 : f32 to vector<4x16xf32>
    %212 = arith.mulf %211, %208 : vector<4x16xf32>
    %213 = arith.select %210, %208, %212 : vector<4x16xi1>, vector<4x16xf32>
    %c2_153 = arith.constant 2 : index
    %c0_154 = arith.constant 0 : index
    %c0_155 = arith.constant 0 : index
    %c0_156 = arith.constant 0 : index
    %214 = vector.load %arg11[%c2_153, %c0_154, %c0_155, %c0_156] : memref<8x1x4x16xf32, #tpu.memory_space<vmem>>, vector<1x1x4x16xf32>
    %215 = vector.shape_cast %214 : vector<1x1x4x16xf32> to vector<4x16xf32>
    %216 = vector.shape_cast %213 : vector<4x16xf32> to vector<1x1x4x16xf32>
    tpu.vector_store %arg11[%c2_153, %c0_154, %c0_155, %c0_156], %216 {strides = array<i32>} : memref<8x1x4x16xf32, #tpu.memory_space<vmem>>, vector<1x1x4x16xf32>,
    %c3_157 = arith.constant 3 : index
    %c0_158 = arith.constant 0 : index
    %217 = tpu.strided_load %arg12[%c3_157, %c0_158] {strides = array<i32: 8, 1>} : memref<32x16xf32, #tpu.memory_space<vmem>>, vector<4x16xf32>
    %c3_159 = arith.constant 3 : index
    %c0_160 = arith.constant 0 : index
    %c0_161 = arith.constant 0 : index
    %c0_162 = arith.constant 0 : index
    %218 = vector.load %arg1[%c3_159, %c0_160, %c0_161, %c0_162] : memref<8x1x4x4xf32, #tpu.memory_space<vmem>>, vector<1x1x4x4xf32>
    %219 = vector.shape_cast %218 : vector<1x1x4x4xf32> to vector<4x4xf32>
    %cst_163 = arith.constant dense<0.000000e+00> : vector<4x16xf32>
    %220 = tpu.matmul %219, %217, %cst_163 {dimension_numbers = #tpu.dot_dimension_numbers<[1], [0], [0], [1], [0, 0, 1, 1], [], []>} : vector<4x4xf32>, vector<4x16xf32>, vector<4x16xf32> -> vector<4x16xf32>
    %cst_164 = arith.constant dense<0.000000e+00> : vector<4x16xf32>
    %221 = tpu.matmul %220, %177, %cst_164 {dimension_numbers = #tpu.dot_dimension_numbers<[1], [0], [0], [1], [0, 0, 1, 1], [], []>} : vector<4x16xf32>, vector<16x16xf32>, vector<4x16xf32> -> vector<4x16xf32>
    %cst_165 = arith.constant 0.000000e+00 : f32
    %222 = vector.broadcast %cst_165 : f32 to vector<4x16xf32>
    %223 = arith.cmpf oge, %221, %222 : vector<4x16xf32>
    %224 = vector.broadcast %134 : f32 to vector<4x16xf32>
    %225 = arith.mulf %224, %221 : vector<4x16xf32>
    %226 = arith.select %223, %221, %225 : vector<4x16xi1>, vector<4x16xf32>
    %c3_166 = arith.constant 3 : index
    %c0_167 = arith.constant 0 : index
    %c0_168 = arith.constant 0 : index
    %c0_169 = arith.constant 0 : index
    %227 = vector.load %arg11[%c3_166, %c0_167, %c0_168, %c0_169] : memref<8x1x4x16xf32, #tpu.memory_space<vmem>>, vector<1x1x4x16xf32>
    %228 = vector.shape_cast %227 : vector<1x1x4x16xf32> to vector<4x16xf32>
    %229 = vector.shape_cast %226 : vector<4x16xf32> to vector<1x1x4x16xf32>
    tpu.vector_store %arg11[%c3_166, %c0_167, %c0_168, %c0_169], %229 {strides = array<i32>} : memref<8x1x4x16xf32, #tpu.memory_space<vmem>>, vector<1x1x4x16xf32>,
    %c4_170 = arith.constant 4 : index
    %c0_171 = arith.constant 0 : index
    %230 = tpu.strided_load %arg12[%c4_170, %c0_171] {strides = array<i32: 8, 1>} : memref<32x16xf32, #tpu.memory_space<vmem>>, vector<4x16xf32>
    %c4_172 = arith.constant 4 : index
    %c0_173 = arith.constant 0 : index
    %c0_174 = arith.constant 0 : index
    %c0_175 = arith.constant 0 : index
    %231 = vector.load %arg1[%c4_172, %c0_173, %c0_174, %c0_175] : memref<8x1x4x4xf32, #tpu.memory_space<vmem>>, vector<1x1x4x4xf32>
    %232 = vector.shape_cast %231 : vector<1x1x4x4xf32> to vector<4x4xf32>
    %cst_176 = arith.constant dense<0.000000e+00> : vector<4x16xf32>
    %233 = tpu.matmul %232, %230, %cst_176 {dimension_numbers = #tpu.dot_dimension_numbers<[1], [0], [0], [1], [0, 0, 1, 1], [], []>} : vector<4x4xf32>, vector<4x16xf32>, vector<4x16xf32> -> vector<4x16xf32>
    %cst_177 = arith.constant dense<0.000000e+00> : vector<4x16xf32>
    %234 = tpu.matmul %233, %177, %cst_177 {dimension_numbers = #tpu.dot_dimension_numbers<[1], [0], [0], [1], [0, 0, 1, 1], [], []>} : vector<4x16xf32>, vector<16x16xf32>, vector<4x16xf32> -> vector<4x16xf32>
    %cst_178 = arith.constant 0.000000e+00 : f32
    %235 = vector.broadcast %cst_178 : f32 to vector<4x16xf32>
    %236 = arith.cmpf oge, %234, %235 : vector<4x16xf32>
    %237 = vector.broadcast %134 : f32 to vector<4x16xf32>
    %238 = arith.mulf %237, %234 : vector<4x16xf32>
    %239 = arith.select %236, %234, %238 : vector<4x16xi1>, vector<4x16xf32>
    %c4_179 = arith.constant 4 : index
    %c0_180 = arith.constant 0 : index
    %c0_181 = arith.constant 0 : index
    %c0_182 = arith.constant 0 : index
    %240 = vector.load %arg11[%c4_179, %c0_180, %c0_181, %c0_182] : memref<8x1x4x16xf32, #tpu.memory_space<vmem>>, vector<1x1x4x16xf32>
    %241 = vector.shape_cast %240 : vector<1x1x4x16xf32> to vector<4x16xf32>
    %242 = vector.shape_cast %239 : vector<4x16xf32> to vector<1x1x4x16xf32>
    tpu.vector_store %arg11[%c4_179, %c0_180, %c0_181, %c0_182], %242 {strides = array<i32>} : memref<8x1x4x16xf32, #tpu.memory_space<vmem>>, vector<1x1x4x16xf32>,
    %c5 = arith.constant 5 : index
    %c0_183 = arith.constant 0 : index
    %243 = tpu.strided_load %arg12[%c5, %c0_183] {strides = array<i32: 8, 1>} : memref<32x16xf32, #tpu.memory_space<vmem>>, vector<4x16xf32>
    %c5_184 = arith.constant 5 : index
    %c0_185 = arith.constant 0 : index
    %c0_186 = arith.constant 0 : index
    %c0_187 = arith.constant 0 : index
    %244 = vector.load %arg1[%c5_184, %c0_185, %c0_186, %c0_187] : memref<8x1x4x4xf32, #tpu.memory_space<vmem>>, vector<1x1x4x4xf32>
    %245 = vector.shape_cast %244 : vector<1x1x4x4xf32> to vector<4x4xf32>
    %cst_188 = arith.constant dense<0.000000e+00> : vector<4x16xf32>
    %246 = tpu.matmul %245, %243, %cst_188 {dimension_numbers = #tpu.dot_dimension_numbers<[1], [0], [0], [1], [0, 0, 1, 1], [], []>} : vector<4x4xf32>, vector<4x16xf32>, vector<4x16xf32> -> vector<4x16xf32>
    %cst_189 = arith.constant dense<0.000000e+00> : vector<4x16xf32>
    %247 = tpu.matmul %246, %177, %cst_189 {dimension_numbers = #tpu.dot_dimension_numbers<[1], [0], [0], [1], [0, 0, 1, 1], [], []>} : vector<4x16xf32>, vector<16x16xf32>, vector<4x16xf32> -> vector<4x16xf32>
    %cst_190 = arith.constant 0.000000e+00 : f32
    %248 = vector.broadcast %cst_190 : f32 to vector<4x16xf32>
    %249 = arith.cmpf oge, %247, %248 : vector<4x16xf32>
    %250 = vector.broadcast %134 : f32 to vector<4x16xf32>
    %251 = arith.mulf %250, %247 : vector<4x16xf32>
    %252 = arith.select %249, %247, %251 : vector<4x16xi1>, vector<4x16xf32>
    %c5_191 = arith.constant 5 : index
    %c0_192 = arith.constant 0 : index
    %c0_193 = arith.constant 0 : index
    %c0_194 = arith.constant 0 : index
    %253 = vector.load %arg11[%c5_191, %c0_192, %c0_193, %c0_194] : memref<8x1x4x16xf32, #tpu.memory_space<vmem>>, vector<1x1x4x16xf32>
    %254 = vector.shape_cast %253 : vector<1x1x4x16xf32> to vector<4x16xf32>
    %255 = vector.shape_cast %252 : vector<4x16xf32> to vector<1x1x4x16xf32>
    tpu.vector_store %arg11[%c5_191, %c0_192, %c0_193, %c0_194], %255 {strides = array<i32>} : memref<8x1x4x16xf32, #tpu.memory_space<vmem>>, vector<1x1x4x16xf32>,
    %c6 = arith.constant 6 : index
    %c0_195 = arith.constant 0 : index
    %256 = tpu.strided_load %arg12[%c6, %c0_195] {strides = array<i32: 8, 1>} : memref<32x16xf32, #tpu.memory_space<vmem>>, vector<4x16xf32>
    %c6_196 = arith.constant 6 : index
    %c0_197 = arith.constant 0 : index
    %c0_198 = arith.constant 0 : index
    %c0_199 = arith.constant 0 : index
    %257 = vector.load %arg1[%c6_196, %c0_197, %c0_198, %c0_199] : memref<8x1x4x4xf32, #tpu.memory_space<vmem>>, vector<1x1x4x4xf32>
    %258 = vector.shape_cast %257 : vector<1x1x4x4xf32> to vector<4x4xf32>
    %cst_200 = arith.constant dense<0.000000e+00> : vector<4x16xf32>
    %259 = tpu.matmul %258, %256, %cst_200 {dimension_numbers = #tpu.dot_dimension_numbers<[1], [0], [0], [1], [0, 0, 1, 1], [], []>} : vector<4x4xf32>, vector<4x16xf32>, vector<4x16xf32> -> vector<4x16xf32>
    %cst_201 = arith.constant dense<0.000000e+00> : vector<4x16xf32>
    %260 = tpu.matmul %259, %177, %cst_201 {dimension_numbers = #tpu.dot_dimension_numbers<[1], [0], [0], [1], [0, 0, 1, 1], [], []>} : vector<4x16xf32>, vector<16x16xf32>, vector<4x16xf32> -> vector<4x16xf32>
    %cst_202 = arith.constant 0.000000e+00 : f32
    %261 = vector.broadcast %cst_202 : f32 to vector<4x16xf32>
    %262 = arith.cmpf oge, %260, %261 : vector<4x16xf32>
    %263 = vector.broadcast %134 : f32 to vector<4x16xf32>
    %264 = arith.mulf %263, %260 : vector<4x16xf32>
    %265 = arith.select %262, %260, %264 : vector<4x16xi1>, vector<4x16xf32>
    %c6_203 = arith.constant 6 : index
    %c0_204 = arith.constant 0 : index
    %c0_205 = arith.constant 0 : index
    %c0_206 = arith.constant 0 : index
    %266 = vector.load %arg11[%c6_203, %c0_204, %c0_205, %c0_206] : memref<8x1x4x16xf32, #tpu.memory_space<vmem>>, vector<1x1x4x16xf32>
    %267 = vector.shape_cast %266 : vector<1x1x4x16xf32> to vector<4x16xf32>
    %268 = vector.shape_cast %265 : vector<4x16xf32> to vector<1x1x4x16xf32>
    tpu.vector_store %arg11[%c6_203, %c0_204, %c0_205, %c0_206], %268 {strides = array<i32>} : memref<8x1x4x16xf32, #tpu.memory_space<vmem>>, vector<1x1x4x16xf32>,
    %c7 = arith.constant 7 : index
    %c0_207 = arith.constant 0 : index
    %269 = tpu.strided_load %arg12[%c7, %c0_207] {strides = array<i32: 8, 1>} : memref<32x16xf32, #tpu.memory_space<vmem>>, vector<4x16xf32>
    %c7_208 = arith.constant 7 : index
    %c0_209 = arith.constant 0 : index
    %c0_210 = arith.constant 0 : index
    %c0_211 = arith.constant 0 : index
    %270 = vector.load %arg1[%c7_208, %c0_209, %c0_210, %c0_211] : memref<8x1x4x4xf32, #tpu.memory_space<vmem>>, vector<1x1x4x4xf32>
    %271 = vector.shape_cast %270 : vector<1x1x4x4xf32> to vector<4x4xf32>
    %cst_212 = arith.constant dense<0.000000e+00> : vector<4x16xf32>
    %272 = tpu.matmul %271, %269, %cst_212 {dimension_numbers = #tpu.dot_dimension_numbers<[1], [0], [0], [1], [0, 0, 1, 1], [], []>} : vector<4x4xf32>, vector<4x16xf32>, vector<4x16xf32> -> vector<4x16xf32>
    %cst_213 = arith.constant dense<0.000000e+00> : vector<4x16xf32>
    %273 = tpu.matmul %272, %177, %cst_213 {dimension_numbers = #tpu.dot_dimension_numbers<[1], [0], [0], [1], [0, 0, 1, 1], [], []>} : vector<4x16xf32>, vector<16x16xf32>, vector<4x16xf32> -> vector<4x16xf32>
    %cst_214 = arith.constant 0.000000e+00 : f32
    %274 = vector.broadcast %cst_214 : f32 to vector<4x16xf32>
    %275 = arith.cmpf oge, %273, %274 : vector<4x16xf32>
    %276 = vector.broadcast %134 : f32 to vector<4x16xf32>
    %277 = arith.mulf %276, %273 : vector<4x16xf32>
    %278 = arith.select %275, %273, %277 : vector<4x16xi1>, vector<4x16xf32>
    %c7_215 = arith.constant 7 : index
    %c0_216 = arith.constant 0 : index
    %c0_217 = arith.constant 0 : index
    %c0_218 = arith.constant 0 : index
    %279 = vector.load %arg11[%c7_215, %c0_216, %c0_217, %c0_218] : memref<8x1x4x16xf32, #tpu.memory_space<vmem>>, vector<1x1x4x16xf32>
    %280 = vector.shape_cast %279 : vector<1x1x4x16xf32> to vector<4x16xf32>
    %281 = vector.shape_cast %278 : vector<4x16xf32> to vector<1x1x4x16xf32>
    tpu.vector_store %arg11[%c7_215, %c0_216, %c0_217, %c0_218], %281 {strides = array<i32>} : memref<8x1x4x16xf32, #tpu.memory_space<vmem>>, vector<1x1x4x16xf32>,
    return
  }
  func.func @transform_0(%arg0: i32) -> (i32, i32, i32, i32) {
    %c0_i32 = arith.constant 0 : i32
    %c0_i32_0 = arith.constant 0 : i32
    %c0_i32_1 = arith.constant 0 : i32
    %c0_i32_2 = arith.constant 0 : i32
    return %c0_i32, %arg0, %c0_i32_0, %c0_i32_1 : i32, i32, i32, i32
  }
  func.func @transform_1(%arg0: i32) -> (i32, i32, i32, i32) {
    %c0_i32 = arith.constant 0 : i32
    %c0_i32_0 = arith.constant 0 : i32
    %c0_i32_1 = arith.constant 0 : i32
    %c0_i32_2 = arith.constant 0 : i32
    return %c0_i32, %arg0, %c0_i32_0, %c0_i32_1 : i32, i32, i32, i32
  }
  func.func @transform_2(%arg0: i32) -> (i32, i32, i32, i32) {
    %c0_i32 = arith.constant 0 : i32
    %c0_i32_0 = arith.constant 0 : i32
    %c0_i32_1 = arith.constant 0 : i32
    %c0_i32_2 = arith.constant 0 : i32
    %c0_i32_3 = arith.constant 0 : i32
    return %c0_i32, %c0_i32_0, %c0_i32_1, %c0_i32_2 : i32, i32, i32, i32
  }
  func.func @transform_3(%arg0: i32) -> (i32, i32, i32, i32) {
    %c0_i32 = arith.constant 0 : i32
    %c0_i32_0 = arith.constant 0 : i32
    %c0_i32_1 = arith.constant 0 : i32
    %c0_i32_2 = arith.constant 0 : i32
    %c0_i32_3 = arith.constant 0 : i32
    return %c0_i32, %c0_i32_0, %c0_i32_1, %c0_i32_2 : i32, i32, i32, i32
  }
  func.func @transform_4(%arg0: i32) -> (i32, i32) {
    %c0_i32 = arith.constant 0 : i32
    %c0_i32_0 = arith.constant 0 : i32
    %c0_i32_1 = arith.constant 0 : i32
    return %c0_i32, %c0_i32_0 : i32, i32
  }
  func.func @transform_5(%arg0: i32) -> (i32, i32) {
    %c0_i32 = arith.constant 0 : i32
    %c0_i32_0 = arith.constant 0 : i32
    %c0_i32_1 = arith.constant 0 : i32
    return %c0_i32, %c0_i32_0 : i32, i32
  }
  func.func @transform_6(%arg0: i32) -> (i32, i32) {
    %c0_i32 = arith.constant 0 : i32
    %c0_i32_0 = arith.constant 0 : i32
    %c0_i32_1 = arith.constant 0 : i32
    return %c0_i32, %c0_i32_0 : i32, i32
  }
  func.func @transform_7(%arg0: i32) -> (i32, i32) {
    %c0_i32 = arith.constant 0 : i32
    %c0_i32_0 = arith.constant 0 : i32
    %c0_i32_1 = arith.constant 0 : i32
    return %c0_i32, %c0_i32_0 : i32, i32
  }
  func.func @transform_8(%arg0: i32) -> i32 {
    %c0_i32 = arith.constant 0 : i32
    %c0_i32_0 = arith.constant 0 : i32
    return %c0_i32 : i32
  }
  func.func @transform_9(%arg0: i32) -> (i32, i32, i32, i32) {
    %c0_i32 = arith.constant 0 : i32
    %c0_i32_0 = arith.constant 0 : i32
    %c0_i32_1 = arith.constant 0 : i32
    %c0_i32_2 = arith.constant 0 : i32
    return %c0_i32, %arg0, %c0_i32_0, %c0_i32_1 : i32, i32, i32, i32
  }
  func.func @transform_10(%arg0: i32) -> (i32, i32, i32, i32) {
    %c0_i32 = arith.constant 0 : i32
    %c0_i32_0 = arith.constant 0 : i32
    %c0_i32_1 = arith.constant 0 : i32
    %c0_i32_2 = arith.constant 0 : i32
    return %c0_i32, %arg0, %c0_i32_0, %c0_i32_1 : i32, i32, i32, i32
  }
}

</mosaic_0001>

<bundles_post_ra>
// kernel: sparse_graph_convolution_forward.1
= control target key start
LH: loop header
LB: loop body
LE: loop exit
PB: predicated region body
PF: predicated region fallthrough
CT: control target
= control target key end

     0   :  { %s2713_s0 = inlined_call_operand.vmem [shape: f32[8,4,4,4], index: 0, kind: input, shape index: {}]   ;;  %s2714_s1 = inlined_call_operand.vmem [shape: f32[4,4,8,8], index: 1, kind: input, shape index: {}]   ;;  %s2715_s2 = inlined_call_operand.vmem [shape: f32[8,1,4,16], index: 2, kind: input, shape index: {}]   ;;  %s2716_s3 = inlined_call_operand.vmem [shape: f32[4,1,8,16], index: 3, kind: input, shape index: {}]   ;;  %s2717_s4 = inlined_call_operand.vmem [shape: f32[16,16], index: 4, kind: input, shape index: {}]   ;;  %s2718_s5 = inlined_call_operand.vmem [shape: f32[16,16], index: 5, kind: input, shape index: {}]   ;;  %s2719_s6 = inlined_call_operand.vmem [shape: f32[16,16], index: 6, kind: input, shape index: {}]   ;;  %s2720_s7 = inlined_call_operand.vmem [shape: f32[16,16], index: 7, kind: input, shape index: {}]   ;;  %s2721_s8 = inlined_call_operand.vmem [shape: f32[4], index: 8, kind: input, shape index: {}]   ;;  %s2722_s9 = inlined_call_operand.hbm [shape: f32[4,4,8,16], index: 9, kind: output, shape index: {0}]   ;;  %s2723_s10 = inlined_call_operand.vmem [shape: f32[8,4,4,16], index: 10, kind: output, shape index: {1}]  }
   0x1   :  { %2725 = sst [smem:[#allocation12_spill]] %s2713_s0 }
   0x2   :  { %2726 = sst [smem:[#allocation13_spill]] %s2714_s1 }
   0x3   :  { %2727 = sst [smem:[#allocation14_spill]] %s2715_s2 }
   0x4   :  { %2728 = sst [smem:[#allocation15_spill]] %s2716_s3 }
   0x5   :  { %2729 = sst [smem:[#allocation16_spill]] %s2717_s4 }
   0x6   :  { %16 = vsyncpa [#allocation7], 0 }
   0x7   :  { %17 = vsyncpa [#allocation6], 0 }
   0x8   :  { %19 = vsyncpa [#allocation6 + $0x1], 0  ;;  %s2382_s13 = smov 0   ;;  %s2384_s14 = smov 0  }
   0x9   :  { %s2386_s15 = smov 0   ;;  %s2388_s16 = smov 0  }
   0xa LB: > { %s2403_s17 = sadd.s32 4294967295, %s2321_s16   ;;  %s2080_s18 = sadd.s32 4294967294, %s2321_s16   ;;  %s2321_s16 = sphi %s2388_s16, %s2743_s16   ;;  %s2317_s15 = sphi %s2386_s15, %s2742_s15   ;;  %s2313_s14 = sphi %s2384_s14, %s2741_s14   ;;  %s2309_s13 = sphi %s2382_s13, %s2740_s13  }
   0xb   : > { %s2407_s19 = sadd.s32 1, %s2321_s16   ;;  %s32_s20 = sadd.s32 1, %s2317_s15 }
   0xc   : > { %s29_s21 = ssub.s32 %s2321_s16, %s2407_s19  ;;  %p39_p0 = scmp.ne.s32.totalorder %s2317_s15, %s2313_s14 }
   0xd   : > { %p30_p1 = scmp.eq.s32.totalorder %s29_s21, 0  ;;  %p40_p2 = scmp.eq.s32.totalorder %s2321_s16, 0 }
   0xe   : > { %p242_p3 = scmp.eq.s32.totalorder %s2403_s17, 3  ;;  %p247_p4 = scmp.ne.s32.totalorder %s2313_s14, %s2309_s13 }
   0xf   : > { %s2419_s22 = scalar_select %p30_p1, %s2317_s15, %s32_s20  }
  0x10   : > { %p2421_p5 = por %p40_p2, %p39_p0  ;;  %p2425_p6 = por %p242_p3, %p39_p0 }
  0x11   : > { %p248_p7 = scmp.eq.s32.totalorder %s2080_s18, 3  ;;  %p2081_p8 = scmp.ge.s32.totalorder %s2321_s16, 1 }
  0x12   : > { %p281_p9 = scmp.lt.s32.totalorder %s2321_s16, 5  ;;  %p2201_p11 = scmp.eq.s32.totalorder %s2403_s17, 0 }
  0x13   : > { %p2431_p10 = por %p248_p7, %p247_p4  ;;  %s311_s29 = sshll.u32 %s2721_s8, 4  ;;  %s312_s29 = int_to_ptr.vmem [resolvable:$true] %s311_s29 }
  0x14   : > { %p2436_p12 = pnand %p2081_p8, %p281_p9  ;;  %s2323_s30 = smov [#allocation5]  }
  0x15   : > { %p2083_p1 = scmp.ge.s32.totalorder %s2321_s16, 4 }
  0x16   : > { %p2193_p13 = pneg %p2436_p12 }
  0x17   : > { %318 = sbr.rel (%p2083_p1) target bundleno = 60 (0x3c), region = 44 }
  0x18   : > { %p2194_p0 = pnand %p2201_p11, %p2193_p13 }
  0x1a   : > { %2196 = dma.vmem_to_smem (!%p2194_p0), %s312_s29, 16, %s2323_s30, [#allocation7]  }
  0x1c   : > { %321 = sbr.rel (!%p2421_p5) target bundleno = 46 (0x2e), region = 48  ;;  %s323_s11 = sand.u32 (%p2421_p5), 1, %s2317_s15  }
  0x1d   : > { %s2085_s12 = sshll.u32 (%p2421_p5), %s2321_s16, 2  ;;  %s2084_s18 = sshll.u32 (%p2421_p5), %s323_s11, 5 }
  0x1e   : > { %s2734_s0 = sld [smem:[#allocation12_spill]] (%p2421_p5)  ;;  %s325_s28 = scalar_lea.vmem (%p2421_p5), [#allocation3], %s2084_s18 }
  0x24   : > { %s327_s27 = scalar_lea.vmem %s2734_s0, %s2085_s12 }
  0x25   : > { %v344_v0 = vld [vmem:[%s327_s27] sm:$0xf]  ;;  %v346_v1 = vld [vmem:[%s327_s27 + $0x10] sm:$0xf] }
  0x26   : > { %345 = vst [vmem:[%s325_s28] sm:$0xf] %v344_v0  ;;  %v348_v2 = vld [vmem:[%s327_s27 + $0x20] sm:$0xf]  ;;  %v350_v3 = vld [vmem:[%s327_s27 + $0x30] sm:$0xf] }
  0x27   : > { %347 = vst [vmem:[%s325_s28 + $0x4] sm:$0xf] %v346_v1  ;;  %v352_v4 = vld [vmem:[%s327_s27 + $0x40] sm:$0xf]  ;;  %v354_v5 = vld [vmem:[%s327_s27 + $0x50] sm:$0xf] }
  0x28   : > { %349 = vst [vmem:[%s325_s28 + $0x8] sm:$0xf] %v348_v2  ;;  %v356_v6 = vld [vmem:[%s327_s27 + $0x60] sm:$0xf]  ;;  %v358_v7 = vld [vmem:[%s327_s27 + $0x70] sm:$0xf] }
  0x29   : > { %351 = vst [vmem:[%s325_s28 + $0xc] sm:$0xf] %v350_v3 }
  0x2a   : > { %353 = vst [vmem:[%s325_s28 + $0x10] sm:$0xf] %v352_v4 }
  0x2b   : > { %355 = vst [vmem:[%s325_s28 + $0x14] sm:$0xf] %v354_v5 }
  0x2c   : > { %357 = vst [vmem:[%s325_s28 + $0x18] sm:$0xf] %v356_v6 }
  0x2d   : > { %359 = vst [vmem:[%s325_s28 + $0x1c] sm:$0xf] %v358_v7 }
  0x2e PF: > { %399 = sbr.rel (!%p2421_p5) target bundleno = 60 (0x3c), region = 89  ;;  %s401_s29 = sand.u32 (%p2421_p5), 1, %s2317_s15  }
  0x2f   : > { %s2087_s30 = sshll.u32 (%p2421_p5), %s2321_s16, 3  ;;  %s2086_s11 = sshll.u32 (%p2421_p5), %s401_s29, 5 }
  0x30   : > { %s2735_s1 = sld [smem:[#allocation13_spill]] (%p2421_p5)  ;;  %s403_s21 = scalar_lea.vmem (%p2421_p5), [#allocation4], %s2086_s11 }
  0x36   : > { %s405_s20 = scalar_lea.vmem %s2735_s1, %s2087_s30 }
  0x37   : > { %v440_v8 = vld [vmem:[%s405_s20] sm:$0xff] }
  0x38   : > { %v442_v9 = vld [vmem:[%s405_s20 + $0x20] sm:$0xff]  ;;  %441 = vst [vmem:[%s403_s21] sm:$0xff] %v440_v8 }
  0x39   : > { %v444_v10 = vld [vmem:[%s405_s20 + $0x40] sm:$0xff]  ;;  %443 = vst [vmem:[%s403_s21 + $0x8] sm:$0xff] %v442_v9 }
  0x3a   : > { %v446_v11 = vld [vmem:[%s405_s20 + $0x60] sm:$0xff]  ;;  %445 = vst [vmem:[%s403_s21 + $0x10] sm:$0xff] %v444_v10 }
  0x3b   : > { %447 = vst [vmem:[%s403_s21 + $0x18] sm:$0xff] %v446_v11 }
  0x3c PF: > { %456 = sbr.rel (%p2436_p12) target bundleno = 1085 (0x43d), region = 127  ;;  %s2724_s23 = sand.u32 (!%p2436_p12), 1, %s2313_s14  }
  0x3d   : > { %s2467_s27 = sshll.u32 (!%p2436_p12), %s2724_s23, 5 }
  0x3e   : > { %s2470_s28 = scalar_lea.vmem (!%p2436_p12), [#allocation3], %s2467_s27  ;;  %s2473_s29 = scalar_lea.vmem (!%p2436_p12), [#allocation4], %s2467_s27 }
  0x41   : > { %2300 = dma.done.wait (%p2201_p11), [#allocation7], 16  }
  0x42   : > { %2302 = vsyncadd (%p2201_p11), [#allocation7], 4294967280 }
  0x43   : > { %477 = sfence }
  0x44   : > { %s2736_s2 = sld [smem:[#allocation14_spill]]  ;;  %vm539_vm0 = vcmask 1043456   ;;  %vm535_vm1 = vcmask 31744   ;;  %v521_v14 = vld [vmem:[%s2470_s28 + $0x8] sm:$0xf]  ;;  %vm747_vm2 = vcmask 130048  }
  0x45   : > { %v522_v15 = vld [vmem:[%s2470_s28 + $0xc] sm:$0xf]  ;;  %v519_v20 = vld [vmem:[%s2470_s28] sm:$0xf]  ;;  %v520_v21 = vld [vmem:[%s2470_s28 + $0x4] sm:$0xf] }
  0x46   : > { %s2737_s4 = sld [smem:[#allocation16_spill]]  ;;  %v525_v25 = vld [vmem:[%s2470_s28 + $0x18] sm:$0xf]  ;;  %v526_v26 = vld [vmem:[%s2470_s28 + $0x1c] sm:$0xf]  ;;  %vm775_vm3 = vcmask 125952  }
  0x47   : > { %v523_v27 = vld [vmem:[%s2470_s28 + $0x10] sm:$0xf]  ;;  %v524_v28 = vld [vmem:[%s2470_s28 + $0x14] sm:$0xf]  ;;  %s517_s18 = sld [smem:[#allocation5]]  ;;  %v967_v47 = vld [vmem:[%s2718_s5 + $0x8] sm:$0xff] }
  0x48   : > { %vm970_vm12 = vcmask 64512   ;;  %v2121_v0 = vld [vmem:[%s2473_s29 + $0x8] sm:$0xff]  ;;  %v969_v1 = vld [vmem:[%s2473_s29] sm:$0xff]  ;;  %v2129_v6 = vld [vmem:[%s2473_s29 + $0x18] sm:$0xff]  ;;  %s2738_s3 = sld [smem:[#allocation15_spill]]  ;;  %s2183_s23 = sshll.u32 %s2403_s17, 3 }
  0x49   : > { %v2125_v7 = vld [vmem:[%s2473_s29 + $0x10] sm:$0xff]  ;;  %v966_v8 = vld [vmem:[%s2718_s5] sm:$0xff]  ;;  %s2094_s12 = sld [smem:[#allocation5 + $0x1]]  ;;  %s2739_s26 = sand.u32 1, %s2313_s14  }
  0x4a   : > { %v529_v12 = vld [vmem:[%s2736_s2 + $0x8] sm:$0xf]  ;;  %v530_v13 = vld [vmem:[%s2736_s2 + $0xc] sm:$0xf]  ;;  %v533_v16 = vld [vmem:[%s2736_s2 + $0x18] sm:$0xf] }
  0x4b   : > { %2099 = vmatpush.msk.msra.mxu2 %vm539_vm0, %v529_v12  ;;  %2101 = vmatpush.msk.msra.mxu3 %vm539_vm0, %v530_v13  ;;  %v534_v17 = vld [vmem:[%s2736_s2 + $0x1c] sm:$0xf]  ;;  %v527_v18 = vld [vmem:[%s2736_s2] sm:$0xf]  ;;  %v528_v19 = vld [vmem:[%s2736_s2 + $0x4] sm:$0xf] }
  0x4c   : > { %2100 = vmatmul.msk.f32.vlgmr.msra.gmra.mxu2 %vm535_vm1, %v521_v14  ;;  %2102 = vmatmul.msk.f32.vlgmr.msra.gmra.mxu3 %vm535_vm1, %v522_v15  ;;  %v531_v22 = vld [vmem:[%s2736_s2 + $0x10] sm:$0xf]  ;;  %v532_v23 = vld [vmem:[%s2736_s2 + $0x14] sm:$0xf]  ;;  %v746_v24 = vld [vmem:[%s2737_s4 + $0x8] sm:$0xff]  ;;  %s2133_s20 = sld [smem:[#allocation5 + $0x2]] }
  0x4d   : > { %2107 = vmatpush.msk.msrb.mxu2 %vm539_vm0, %v533_v16  ;;  %2109 = vmatpush.msk.msrb.mxu3 %vm539_vm0, %v534_v17  ;;  %v745_v29 = vld [vmem:[%s2737_s4] sm:$0xff]  ;;  %v772_v38 = vstv %s517_s18  ;;  %v1290_v17 = vld [vmem:[%s2719_s6 + $0x8] sm:$0xff]  ;;  %s2592_s18 = scalar_lea.vmem [#allocation8], %s2467_s27  ;;  %s1862_s30 = scalar_lea.sflag [#allocation6], %s2739_s26 }
  0x4e   : > { %2095 = vmatpush.msk.msra.mxu0 %vm539_vm0, %v527_v18  ;;  %2097 = vmatpush.msk.msra.mxu1 %vm539_vm0, %v528_v19  ;;  %v1195_v9 = vld [vmem:[%s2738_s3 + $0x10] sm:$0xff]  ;;  %v1193_v10 = vld [vmem:[%s2738_s3] sm:$0xff]  ;;  %v1194_v11 = vld [vmem:[%s2738_s3 + $0x8] sm:$0xff] }
  0x4f   : > { %2096 = vmatmul.msk.f32.vlgmr.msra.gmra.mxu0 %vm535_vm1, %v519_v20  ;;  %2098 = vmatmul.msk.f32.vlgmr.msra.gmra.mxu1 %vm535_vm1, %v520_v21  ;;  %v1196_v13 = vld [vmem:[%s2738_s3 + $0x18] sm:$0xff]  ;;  %v1289_v18 = vld [vmem:[%s2719_s6] sm:$0xff]  ;;  %v1018_v21 = vstv %s2094_s12 }
  0x50   : > { %2103 = vmatpush.msk.msrb.mxu0 %vm539_vm0, %v531_v22  ;;  %2105 = vmatpush.msk.msrb.mxu1 %vm539_vm0, %v532_v23 }
  0x51   : > { %821 = vmatpush.msra.mxu2 %v746_v24  ;;  %848 = vmatpush.msra.mxu3 %v746_v24 }
  0x52   : > { %765 = vmatpush.msra.mxu0 %v746_v24  ;;  %794 = vmatpush.msra.mxu1 %v746_v24 }
  0x53   : > { %822 = vmatpush.msra.mxu2 %v745_v29  ;;  %849 = vmatpush.msra.mxu3 %v745_v29 }
  0x54   : > { %2108 = vmatmul.msk.f32.vlgmr.msrb.gmra.mxu2 %vm535_vm1, %v525_v25  ;;  %2110 = vmatmul.msk.f32.vlgmr.msrb.gmra.mxu3 %vm535_vm1, %v526_v26 }
  0x55   : > { %766 = vmatpush.msra.mxu0 %v745_v29  ;;  %795 = vmatpush.msra.mxu1 %v745_v29 }
  0x56   : > { %929 = vmatpush.msrb.mxu2 %v746_v24  ;;  %956 = vmatpush.msrb.mxu3 %v746_v24 }
  0x57   : > { %2104 = vmatmul.msk.f32.vlgmr.msrb.gmra.mxu0 %vm535_vm1, %v523_v27  ;;  %2106 = vmatmul.msk.f32.vlgmr.msrb.gmra.mxu1 %vm535_vm1, %v524_v28 }
  0x58   : > { %875 = vmatpush.msrb.mxu0 %v746_v24  ;;  %902 = vmatpush.msrb.mxu1 %v746_v24 }
  0x59   : > { %930 = vmatpush.msrb.mxu2 %v745_v29  ;;  %957 = vmatpush.msrb.mxu3 %v745_v29 }
  0x5a   : > { %876 = vmatpush.msrb.mxu0 %v745_v29  ;;  %903 = vmatpush.msrb.mxu1 %v745_v29 }
  0xcc   : > { %v560_v30 = vpop.f32.mrf.mxu0  ;;  %v586_v31 = vpop.f32.mrf.mxu1 }
  0xcd   : > { %2111 = vmatmul.msk.f32.vlgmr.msra.gmra.mxu0 %vm747_vm2, %v560_v30  ;;  %2112 = vmatmul.msk.f32.vlgmr.msra.gmra.mxu1 %vm747_vm2, %v586_v31 }
  0xce   : > { %1011 = vmatpush.msra.mxu1 %v967_v47 }
  0xcf   : > { %v612_v32 = vpop.f32.mrf.mxu2  ;;  %v638_v33 = vpop.f32.mrf.mxu3 }
  0xd0   : > { %2113 = vmatmul.msk.f32.vlgmr.msra.gmra.mxu2 %vm747_vm2, %v612_v32  ;;  %2114 = vmatmul.msk.f32.vlgmr.msra.gmra.mxu3 %vm747_vm2, %v638_v33 }
  0xd1   : > { %1066 = vmatpush.msra.mxu3 %v967_v47  ;;  %1012 = vmatpush.msra.mxu1 %v966_v8 }
  0xd3   : > { %1067 = vmatpush.msra.mxu3 %v966_v8 }
  0xd4   : > { %v664_v34 = vpop.f32.mrf.mxu0  ;;  %v690_v35 = vpop.f32.mrf.mxu1 }
  0xd5   : > { %2115 = vmatmul.msk.f32.vlgmr.msrb.gmra.mxu0 %vm747_vm2, %v664_v34  ;;  %2116 = vmatmul.msk.f32.vlgmr.msrb.gmra.mxu1 %vm747_vm2, %v690_v35 }
  0xd6   : > { %1121 = vmatpush.msrb.mxu1 %v967_v47 }
  0xd7   : > { %v716_v36 = vpop.f32.mrf.mxu2  ;;  %v742_v37 = vpop.f32.mrf.mxu3 }
  0xd8   : > { %2117 = vmatmul.msk.f32.vlgmr.msrb.gmra.mxu2 %vm747_vm2, %v716_v36  ;;  %2118 = vmatmul.msk.f32.vlgmr.msrb.gmra.mxu3 %vm747_vm2, %v742_v37  ;;  %v1315_v36 = vstv %s2133_s20  ;;  %s1876_s20 = scalar_lea.hbm %s2722_s9, %s2183_s23 }
  0xd9   : > { %1176 = vmatpush.msrb.mxu3 %v967_v47  ;;  %1122 = vmatpush.msrb.mxu1 %v966_v8  ;;  %s1879_s21 = sshll.u32 %s1876_s20, 4  ;;  %s1880_s21 = int_to_ptr.hbm [resolvable:$true] %s1879_s21 }
  0xda   : > { %s2269_s11 = sshra.s32 %s1880_s21, 4  ;;  %s2270_s11 = int_to_ptr.hbm [resolvable:$true] %s2269_s11 }
  0xdb   : > { %1177 = vmatpush.msrb.mxu3 %v966_v8  ;;  %s2271_s0 = scalar_lea.hbm %s2270_s11, 32  ;;  %p2276_p5 = scmp.lt.s32.totalorder %s2270_s11, %s2722_s9 }
  0xdc   : > { %p2272_p2 = scmp.ne.s32.totalorder %s2270_s11, %s2271_s0 }
  0xde   : > { %p2273_p3 = pnand %p2272_p2, %p2425_p6 }
  0xe0   : > { %p2274_p4 = pneg %p2273_p3 }
 0x14a   : > { %v768_v39 = vpop.f32.mrf.mxu0  ;;  %v797_v40 = vpop.f32.mrf.mxu1 }
 0x14b   : > { %vm771_vm4 = vcmp.ge.f32.partialorder %v768_v39, 0.0  ;;  %v773_v41 = vmul.f32 %v772_v38, %v768_v39  ;;  %vm800_vm5 = vcmp.ge.f32.partialorder %v797_v40, 0.0  ;;  %v801_v42 = vmul.f32 %v797_v40, %v772_v38 }
 0x14d   : > { %v774_v43 = vsel %vm771_vm4, %v768_v39, %v773_v41  ;;  %v802_v44 = vsel %vm800_vm5, %v797_v40, %v801_v42 }
 0x14e   : > { %776 = vst.msk [vmem:[#allocation2] sm:$0xf] %vm775_vm3, %v774_v43 }
 0x14f   : > { %803 = vst.msk [vmem:[#allocation2 + $0x4] sm:$0xf] %vm775_vm3, %v802_v44 }
 0x152   : > { %v878_v45 = vpop.f32.mrf.mxu0  ;;  %v905_v46 = vpop.f32.mrf.mxu1 }
 0x153   : > { %v824_v48 = vpop.f32.mrf.mxu2  ;;  %v851_v49 = vpop.f32.mrf.mxu3  ;;  %vm881_vm6 = vcmp.ge.f32.partialorder %v878_v45, 0.0  ;;  %v882_v50 = vmul.f32 %v878_v45, %v772_v38  ;;  %vm908_vm7 = vcmp.ge.f32.partialorder %v905_v46, 0.0  ;;  %v909_v51 = vmul.f32 %v905_v46, %v772_v38 }
 0x154   : > { %vm827_vm8 = vcmp.ge.f32.partialorder %v824_v48, 0.0  ;;  %v828_v52 = vmul.f32 %v824_v48, %v772_v38  ;;  %vm854_vm9 = vcmp.ge.f32.partialorder %v851_v49, 0.0  ;;  %v855_v53 = vmul.f32 %v851_v49, %v772_v38 }
 0x155   : > { %v883_v54 = vsel %vm881_vm6, %v878_v45, %v882_v50  ;;  %v910_v57 = vsel %vm908_vm7, %v905_v46, %v909_v51  ;;  %v1400_v50 = vld [vmem:[%s2720_s7] sm:$0xff] }
 0x156   : > { %v829_v55 = vsel %vm827_vm8, %v824_v48, %v828_v52  ;;  %v856_v56 = vsel %vm854_vm9, %v851_v49, %v855_v53  ;;  %884 = vst.msk [vmem:[#allocation2 + $0x10] sm:$0xf] %vm775_vm3, %v883_v54  ;;  %v1401_v49 = vld [vmem:[%s2720_s7 + $0x8] sm:$0xff]  ;;  %v1403_v51 = vld [vmem:[%s2470_s28] sm:$0xf] }
 0x157   : > { %830 = vst.msk [vmem:[#allocation2 + $0x8] sm:$0xf] %vm775_vm3, %v829_v55  ;;  %v2146_v52 = vld [vmem:[%s2470_s28 + $0x4] sm:$0xf] }
 0x158   : > { %857 = vst.msk [vmem:[#allocation2 + $0xc] sm:$0xf] %vm775_vm3, %v856_v56 }
 0x159   : > { %911 = vst.msk [vmem:[#allocation2 + $0x14] sm:$0xf] %vm775_vm3, %v910_v57 }
 0x15b   : > { %v932_v58 = vpop.f32.mrf.mxu2  ;;  %v959_v59 = vpop.f32.mrf.mxu3 }
 0x15c   : > { %vm935_vm10 = vcmp.ge.f32.partialorder %v932_v58, 0.0  ;;  %v936_v60 = vmul.f32 %v932_v58, %v772_v38  ;;  %vm962_vm11 = vcmp.ge.f32.partialorder %v959_v59, 0.0  ;;  %v963_v61 = vmul.f32 %v959_v59, %v772_v38 }
 0x15e   : > { %v937_v62 = vsel %vm935_vm10, %v932_v58, %v936_v60  ;;  %v964_v63 = vsel %vm962_vm11, %v959_v59, %v963_v61  ;;  %v2151_v59 = vld [vmem:[%s2470_s28 + $0x8] sm:$0xf]  ;;  %v2156_v60 = vld [vmem:[%s2470_s28 + $0xc] sm:$0xf] }
 0x15f   : > { %938 = vst.msk [vmem:[#allocation2 + $0x18] sm:$0xf] %vm775_vm3, %v937_v62 }
 0x160   : > { %965 = vst.msk [vmem:[#allocation2 + $0x1c] sm:$0xf] %vm775_vm3, %v964_v63  ;;  %v2166_v63 = vld [vmem:[%s2470_s28 + $0x14] sm:$0xf] }
 0x167   : > { %v968_v2 = vld [vmem:[#allocation2] ss:$4 sm:$0xff]  ;;  %v1023_v3 = vld [vmem:[#allocation2 + $0x1] ss:$4 sm:$0xff]  ;;  %v1078_v4 = vld [vmem:[#allocation2 + $0x2] ss:$4 sm:$0xff] }
 0x168   : > { %989 = vmatpush.msra.mxu0 %v968_v2  ;;  %1044 = vmatpush.msra.mxu2 %v1023_v3  ;;  %v1133_v5 = vld [vmem:[#allocation2 + $0x3] ss:$4 sm:$0xff] }
 0x169   : > { %2122 = vmatmul.msk.f32.vlgmr.msra.gmra.mxu2 %vm970_vm12, %v2121_v0  ;;  %2119 = vmatmul.msk.f32.vlgmr.msra.gmra.mxu0 %vm970_vm12, %v969_v1  ;;  %v2171_v2 = vld [vmem:[%s2470_s28 + $0x18] sm:$0xf] }
 0x16a   : > { %1099 = vmatpush.msrb.mxu0 %v1078_v4  ;;  %1154 = vmatpush.msrb.mxu2 %v1133_v5 }
 0x16c   : > { %1261 = vmatpush.msra.mxu2 %v1195_v9  ;;  %1215 = vmatpush.msra.mxu0 %v1193_v10 }
 0x171   : > { %2130 = vmatmul.msk.f32.vlgmr.msrb.gmra.mxu2 %vm970_vm12, %v2129_v6  ;;  %2126 = vmatmul.msk.f32.vlgmr.msrb.gmra.mxu0 %vm970_vm12, %v2125_v7 }
 0x172   : > { %1363 = vmatpush.msrb.mxu2 %v1290_v17  ;;  %1308 = vmatpush.msrb.mxu0 %v1290_v17 }
 0x174   : > { %1364 = vmatpush.msrb.mxu2 %v1289_v18  ;;  %1309 = vmatpush.msrb.mxu0 %v1289_v18 }
 0x179   : > { %2137 = vmatmul.msk.f32.vlgmr.msra.gmra.mxu2 %vm970_vm12, %v2125_v7  ;;  %2135 = vmatmul.msk.f32.vlgmr.msra.gmra.mxu0 %vm970_vm12, %v969_v1  ;;  %v2176_v1 = vld [vmem:[%s2470_s28 + $0x1c] sm:$0xf] }
 0x1e6   : > { %v991_v12 = vpop.f32.mrf.mxu0 }
 0x1e7   : > { %2120 = vmatmul.msk.f32.vlgmr.msra.gmra.mxu1 %vm747_vm2, %v991_v12 }
 0x1e8   : > { %1238 = vmatpush.msra.mxu1 %v1194_v11 }
 0x1ec   : > { %v1046_v14 = vpop.f32.mrf.mxu2 }
 0x1ed   : > { %2123 = vmatmul.msk.f32.vlgmr.msra.gmra.mxu3 %vm747_vm2, %v1046_v14 }
 0x1ee   : > { %1284 = vmatpush.msra.mxu3 %v1196_v13  ;;  %v1101_v15 = vpop.f32.mrf.mxu0 }
 0x1ef   : > { %2127 = vmatmul.msk.f32.vlgmr.msrb.gmra.mxu1 %vm747_vm2, %v1101_v15 }
 0x1f0   : > { %1336 = vmatpush.msrb.mxu1 %v1290_v17 }
 0x1f2   : > { %1337 = vmatpush.msrb.mxu1 %v1289_v18 }
 0x1f4   : > { %v1156_v16 = vpop.f32.mrf.mxu2 }
 0x1f5   : > { %2131 = vmatmul.msk.f32.vlgmr.msrb.gmra.mxu3 %vm747_vm2, %v1156_v16 }
 0x1f6   : > { %1390 = vmatpush.msrb.mxu3 %v1290_v17  ;;  %v1217_v20 = vpop.f32.mrf.mxu0 }
 0x1f7   : > { %2136 = vmatmul.msk.f32.vlgmr.msra.gmra.mxu1 %vm970_vm12, %v2121_v0  ;;  %2139 = vmatmul.msk.f32.vlgmr.msrb.gmra.mxu0 %vm747_vm2, %v1217_v20  ;;  %v2161_v0 = vld [vmem:[%s2470_s28 + $0x10] sm:$0xf]  ;;  %s1877_s28 = sshll.u32 %s2592_s18, 4  ;;  %s1878_s28 = int_to_ptr.vmem [resolvable:$true] %s1877_s28 }
 0x1f8   : > { %1391 = vmatpush.msrb.mxu3 %v1289_v18  ;;  %1447 = vmatpush.msra.mxu1 %v1401_v49 }
 0x1fa   : > { %1448 = vmatpush.msra.mxu1 %v1400_v50 }
 0x1fc   : > { %v1263_v19 = vpop.f32.mrf.mxu2 }
 0x1fd   : > { %2138 = vmatmul.msk.f32.vlgmr.msra.gmra.mxu3 %vm970_vm12, %v2129_v6  ;;  %2141 = vmatmul.msk.f32.vlgmr.msrb.gmra.mxu2 %vm747_vm2, %v1263_v19 }
 0x1fe   : > { %1504 = vmatpush.msra.mxu3 %v1401_v49 }
 0x200   : > { %1505 = vmatpush.msra.mxu3 %v1400_v50 }
 0x264   : > { %v1014_v22 = vpop.f32.mrf.mxu1 }
 0x265   : > { %vm1017_vm13 = vcmp.ge.f32.partialorder %v1014_v22, 0.0  ;;  %v1019_v23 = vmul.f32 %v1018_v21, %v1014_v22 }
 0x267   : > { %v1020_v24 = vsel %vm1017_vm13, %v1014_v22, %v1019_v23 }
 0x268   : > { %1021 = vst.msk [vmem:[%s2592_s18] sm:$0xff] %vm747_vm2, %v1020_v24 }
 0x26c   : > { %v1124_v25 = vpop.f32.mrf.mxu1 }
 0x26d   : > { %vm1127_vm14 = vcmp.ge.f32.partialorder %v1124_v25, 0.0  ;;  %v1128_v26 = vmul.f32 %v1124_v25, %v1018_v21 }
 0x26f   : > { %v1129_v28 = vsel %vm1127_vm14, %v1124_v25, %v1128_v26 }
 0x270   : > { %v1069_v27 = vpop.f32.mrf.mxu3  ;;  %2128 = vst.msk [vmem:[%s2592_s18 + $0x10] sm:$0xff] %vm747_vm2, %v1129_v28 }
 0x271   : > { %vm1072_vm15 = vcmp.ge.f32.partialorder %v1069_v27, 0.0  ;;  %v1073_v29 = vmul.f32 %v1069_v27, %v1018_v21 }
 0x273   : > { %v1074_v30 = vsel %vm1072_vm15, %v1069_v27, %v1073_v29 }
 0x274   : > { %2124 = vst.msk [vmem:[%s2592_s18 + $0x8] sm:$0xff] %vm747_vm2, %v1074_v30  ;;  %v1240_v31 = vpop.f32.mrf.mxu1  ;;  %v1311_v37 = vpop.f32.mrf.mxu0 }
 0x275   : > { %2140 = vmatmul.msk.f32.vlgmr.msrb.gmra.mxu1 %vm747_vm2, %v1240_v31  ;;  %vm1314_vm5 = vcmp.ge.f32.partialorder %v1311_v37, 0.0  ;;  %v1316_v38 = vmul.f32 %v1315_v36, %v1311_v37 }
 0x276   : > { %1561 = vmatpush.msrb.mxu1 %v1401_v49 }
 0x277   : > { %v1317_v39 = vsel %vm1314_vm5, %v1311_v37, %v1316_v38 }
 0x278   : > { %v1179_v32 = vpop.f32.mrf.mxu3  ;;  %1318 = vst.msk [vmem:[#allocation2] sm:$0xff] %vm747_vm2, %v1317_v39  ;;  %1562 = vmatpush.msrb.mxu1 %v1400_v50 }
 0x279   : > { %vm1182_vm4 = vcmp.ge.f32.partialorder %v1179_v32, 0.0  ;;  %v1183_v33 = vmul.f32 %v1179_v32, %v1018_v21 }
 0x27b   : > { %v1184_v34 = vsel %vm1182_vm4, %v1179_v32, %v1183_v33 }
 0x27c   : > { %2132 = vst.msk [vmem:[%s2592_s18 + $0x18] sm:$0xff] %vm747_vm2, %v1184_v34  ;;  %s2275_s18 = scalar_lea.hbm %s2722_s9, 128 }
 0x27d   : > { %p2277_p7 = scmp.lt.s32.totalorder %s2275_s18, %s2271_s0 }
 0x27f   : > { %p2278_p8 = por %p2277_p7, %p2276_p5 }
 0x280   : > { %v1286_v35 = vpop.f32.mrf.mxu3  ;;  %v1366_v40 = vpop.f32.mrf.mxu2 }
 0x281   : > { %2142 = vmatmul.msk.f32.vlgmr.msrb.gmra.mxu3 %vm747_vm2, %v1286_v35  ;;  %vm1369_vm6 = vcmp.ge.f32.partialorder %v1366_v40, 0.0  ;;  %v1370_v41 = vmul.f32 %v1366_v40, %v1315_v36  ;;  %p2279_p9 = pnand %p2278_p8, %p2274_p4 }
 0x282   : > { %1618 = vmatpush.msrb.mxu3 %v1401_v49 }
 0x283   : > { %v1371_v42 = vsel %vm1369_vm6, %v1366_v40, %v1370_v41 }
 0x284   : > { %1372 = vst.msk [vmem:[#allocation2 + $0x10] sm:$0xff] %vm747_vm2, %v1371_v42  ;;  %1619 = vmatpush.msrb.mxu3 %v1400_v50 }
 0x2f2   : > { %v1339_v43 = vpop.f32.mrf.mxu1 }
 0x2f3   : > { %vm1342_vm7 = vcmp.ge.f32.partialorder %v1339_v43, 0.0  ;;  %v1343_v44 = vmul.f32 %v1339_v43, %v1315_v36 }
 0x2f5   : > { %v1344_v45 = vsel %vm1342_vm7, %v1339_v43, %v1343_v44 }
 0x2f6   : > { %1345 = vst.msk [vmem:[#allocation2 + $0x8] sm:$0xff] %vm747_vm2, %v1344_v45 }
 0x304   : > { %v1393_v46 = vpop.f32.mrf.mxu3 }
 0x305   : > { %vm1396_vm8 = vcmp.ge.f32.partialorder %v1393_v46, 0.0  ;;  %v1397_v47 = vmul.f32 %v1393_v46, %v1315_v36 }
 0x307   : > { %v1398_v48 = vsel %vm1396_vm8, %v1393_v46, %v1397_v47 }
 0x308   : > { %1399 = vst.msk [vmem:[#allocation2 + $0x18] sm:$0xff] %vm747_vm2, %v1398_v48 }
 0x30f   : > { %v1402_v53 = vld [vmem:[#allocation2] ss:$8 sm:$0xf]  ;;  %v1458_v54 = vld [vmem:[#allocation2 + $0x1] ss:$8 sm:$0xf] }
 0x310   : > { %2143 = vmatpush.msk.msra.mxu0 %vm539_vm0, %v1402_v53  ;;  %2147 = vmatpush.msk.msra.mxu2 %vm539_vm0, %v1458_v54  ;;  %v1515_v55 = vld [vmem:[#allocation2 + $0x2] ss:$8 sm:$0xf]  ;;  %v1572_v56 = vld [vmem:[#allocation2 + $0x3] ss:$8 sm:$0xf] }
 0x311   : > { %2144 = vmatmul.msk.f32.vlgmr.msra.gmra.mxu0 %vm535_vm1, %v1403_v51  ;;  %2148 = vmatmul.msk.f32.vlgmr.msra.gmra.mxu2 %vm535_vm1, %v2146_v52  ;;  %v1630_v57 = vld [vmem:[#allocation2 + $0x4] ss:$8 sm:$0xf]  ;;  %v1688_v58 = vld [vmem:[#allocation2 + $0x5] ss:$8 sm:$0xf] }
 0x312   : > { %2152 = vmatpush.msk.msrb.mxu0 %vm539_vm0, %v1515_v55  ;;  %2157 = vmatpush.msk.msrb.mxu2 %vm539_vm0, %v1572_v56  ;;  %v1746_v61 = vld [vmem:[#allocation2 + $0x6] ss:$8 sm:$0xf]  ;;  %v1804_v62 = vld [vmem:[#allocation2 + $0x7] ss:$8 sm:$0xf] }
 0x314   : > { %2162 = vmatpush.msk.msra.mxu0 %vm539_vm0, %v1630_v57  ;;  %2167 = vmatpush.msk.msra.mxu2 %vm539_vm0, %v1688_v58 }
 0x319   : > { %2153 = vmatmul.msk.f32.vlgmr.msrb.gmra.mxu0 %vm535_vm1, %v2151_v59  ;;  %2158 = vmatmul.msk.f32.vlgmr.msrb.gmra.mxu2 %vm535_vm1, %v2156_v60 }
 0x31a   : > { %2172 = vmatpush.msk.msrb.mxu0 %vm539_vm0, %v1746_v61  ;;  %2177 = vmatpush.msk.msrb.mxu2 %vm539_vm0, %v1804_v62 }
 0x321   : > { %2168 = vmatmul.msk.f32.vlgmr.msra.gmra.mxu2 %vm535_vm1, %v2166_v63  ;;  %2163 = vmatmul.msk.f32.vlgmr.msra.gmra.mxu0 %vm535_vm1, %v2161_v0 }
 0x329   : > { %2178 = vmatmul.msk.f32.vlgmr.msrb.gmra.mxu2 %vm535_vm1, %v2176_v1  ;;  %2173 = vmatmul.msk.f32.vlgmr.msrb.gmra.mxu0 %vm535_vm1, %v2171_v2 }
 0x38e   : > { %v1427_v3 = vpop.f32.mrf.mxu0 }
 0x38f   : > { %2145 = vmatmul.msk.f32.vlgmr.msra.gmra.mxu1 %vm747_vm2, %v1427_v3 }
 0x390   : > { %1676 = vmatpush.msra.mxu1 %v1401_v49 }
 0x392   : > { %1677 = vmatpush.msra.mxu1 %v1400_v50 }
 0x394   : > { %v1484_v4 = vpop.f32.mrf.mxu2 }
 0x395   : > { %2149 = vmatmul.msk.f32.vlgmr.msra.gmra.mxu3 %vm747_vm2, %v1484_v4 }
 0x396   : > { %1734 = vmatpush.msra.mxu3 %v1401_v49  ;;  %v1541_v5 = vpop.f32.mrf.mxu0 }
 0x397   : > { %2154 = vmatmul.msk.f32.vlgmr.msrb.gmra.mxu1 %vm747_vm2, %v1541_v5 }
 0x398   : > { %1735 = vmatpush.msra.mxu3 %v1400_v50  ;;  %1792 = vmatpush.msrb.mxu1 %v1401_v49 }
 0x39a   : > { %1793 = vmatpush.msrb.mxu1 %v1400_v50 }
 0x39c   : > { %v1598_v6 = vpop.f32.mrf.mxu2 }
 0x39d   : > { %2159 = vmatmul.msk.f32.vlgmr.msrb.gmra.mxu3 %vm747_vm2, %v1598_v6 }
 0x39e   : > { %1850 = vmatpush.msrb.mxu3 %v1401_v49  ;;  %v1656_v7 = vpop.f32.mrf.mxu0 }
 0x39f   : > { %2164 = vmatmul.msk.f32.vlgmr.msra.gmra.mxu1 %vm747_vm2, %v1656_v7 }
 0x3a0   : > { %1851 = vmatpush.msrb.mxu3 %v1400_v50 }
 0x3a4   : > { %v1714_v8 = vpop.f32.mrf.mxu2 }
 0x3a5   : > { %2169 = vmatmul.msk.f32.vlgmr.msra.gmra.mxu3 %vm747_vm2, %v1714_v8 }
 0x3a6   : > { %v1772_v9 = vpop.f32.mrf.mxu0 }
 0x3a7   : > { %2174 = vmatmul.msk.f32.vlgmr.msrb.gmra.mxu1 %vm747_vm2, %v1772_v9 }
 0x3ac   : > { %v1830_v10 = vpop.f32.mrf.mxu2 }
 0x3ad   : > { %2179 = vmatmul.msk.f32.vlgmr.msrb.gmra.mxu3 %vm747_vm2, %v1830_v10 }
 0x3ae   : > { %2282 = shalt.err (!%p2279_p9)
}
 0x3af   : > { %s2324_s23 = smov 128   ;;  %s2325_s29 = smov 512  }
 0x3b0   : > { %s2326_s12 = smov 8   ;;  %s2134_s20 = sld [smem:[#allocation5 + $0x3]] }
 0x3b1   : > { %2191 = dma.vmem_to_hbm [thread:$0]  (%p2425_p6), %s1878_s28, 512, %s1880_s21, %s1862_s30, %s2324_s23, %s2325_s29, %s2326_s12  }
 0x3b2   : > { %s2664_s1 = scalar_lea.vmem [#allocation9], %s2467_s27  ;;  %s2184_s0 = sshll.u32 (%p2425_p6), %s2403_s17, 2 }
 0x3b3   : > { %s1890_s4 = scalar_lea.vmem (%p2425_p6), %s2723_s10, %s2184_s0 }
 0x3b6   : > { %v1454_v11 = vstv %s2134_s20 }
 0x40c   : > { %v1450_v12 = vpop.f32.mrf.mxu1 }
 0x40d   : > { %vm1453_vm0 = vcmp.ge.f32.partialorder %v1450_v12, 0.0  ;;  %v1455_v13 = vmul.f32 %v1454_v11, %v1450_v12 }
 0x40f   : > { %v1456_v14 = vsel %vm1453_vm0, %v1450_v12, %v1455_v13 }
 0x410   : > { %1457 = vst.msk [vmem:[%s2664_s1] sm:$0xf] %vm775_vm3, %v1456_v14 }
 0x414   : > { %v1564_v15 = vpop.f32.mrf.mxu1 }
 0x415   : > { %vm1567_vm1 = vcmp.ge.f32.partialorder %v1564_v15, 0.0  ;;  %v1568_v16 = vmul.f32 %v1564_v15, %v1454_v11 }
 0x417   : > { %v1569_v17 = vsel %vm1567_vm1, %v1564_v15, %v1568_v16  ;;  %v1907_v36 = vld [vmem:[%s2664_s1] sm:$0xf] (%p2425_p6) }
 0x418   : > { %v1507_v18 = vpop.f32.mrf.mxu3  ;;  %2155 = vst.msk [vmem:[%s2664_s1 + $0x8] sm:$0xf] %vm775_vm3, %v1569_v17 }
 0x419   : > { %vm1510_vm2 = vcmp.ge.f32.partialorder %v1507_v18, 0.0  ;;  %v1511_v19 = vmul.f32 %v1507_v18, %v1454_v11  ;;  %1908 = vst [vmem:[%s1890_s4] sm:$0xf] (%p2425_p6), %v1907_v36 }
 0x41b   : > { %v1512_v20 = vsel %vm1510_vm2, %v1507_v18, %v1511_v19 }
 0x41c   : > { %2150 = vst.msk [vmem:[%s2664_s1 + $0x4] sm:$0xf] %vm775_vm3, %v1512_v20  ;;  %v1679_v21 = vpop.f32.mrf.mxu1 }
 0x41d   : > { %vm1682_vm9 = vcmp.ge.f32.partialorder %v1679_v21, 0.0  ;;  %v1683_v22 = vmul.f32 %v1679_v21, %v1454_v11 }
 0x41f   : > { %v1684_v23 = vsel %vm1682_vm9, %v1679_v21, %v1683_v22  ;;  %v1911_v38 = vld [vmem:[%s2664_s1 + $0x8] sm:$0xf] (%p2425_p6) }
 0x420   : > { %v1621_v24 = vpop.f32.mrf.mxu3  ;;  %2165 = vst.msk [vmem:[%s2664_s1 + $0x10] sm:$0xf] %vm775_vm3, %v1684_v23 }
 0x421   : > { %vm1624_vm10 = vcmp.ge.f32.partialorder %v1621_v24, 0.0  ;;  %v1625_v25 = vmul.f32 %v1621_v24, %v1454_v11  ;;  %1912 = vst [vmem:[%s1890_s4 + $0x20] sm:$0xf] (%p2425_p6), %v1911_v38 }
 0x423   : > { %v1626_v26 = vsel %vm1624_vm10, %v1621_v24, %v1625_v25  ;;  %v1909_v37 = vld [vmem:[%s2664_s1 + $0x4] sm:$0xf] (%p2425_p6) }
 0x424   : > { %2160 = vst.msk [vmem:[%s2664_s1 + $0xc] sm:$0xf] %vm775_vm3, %v1626_v26  ;;  %v1795_v27 = vpop.f32.mrf.mxu1 }
 0x425   : > { %vm1798_vm11 = vcmp.ge.f32.partialorder %v1795_v27, 0.0  ;;  %v1799_v28 = vmul.f32 %v1795_v27, %v1454_v11  ;;  %1910 = vst [vmem:[%s1890_s4 + $0x10] sm:$0xf] (%p2425_p6), %v1909_v37 }
 0x427   : > { %v1800_v29 = vsel %vm1798_vm11, %v1795_v27, %v1799_v28  ;;  %v1915_v40 = vld [vmem:[%s2664_s1 + $0x10] sm:$0xf] (%p2425_p6) }
 0x428   : > { %v1737_v30 = vpop.f32.mrf.mxu3  ;;  %2175 = vst.msk [vmem:[%s2664_s1 + $0x18] sm:$0xf] %vm775_vm3, %v1800_v29 }
 0x429   : > { %vm1740_vm12 = vcmp.ge.f32.partialorder %v1737_v30, 0.0  ;;  %v1741_v31 = vmul.f32 %v1737_v30, %v1454_v11  ;;  %1916 = vst [vmem:[%s1890_s4 + $0x40] sm:$0xf] (%p2425_p6), %v1915_v40 }
 0x42b   : > { %v1742_v32 = vsel %vm1740_vm12, %v1737_v30, %v1741_v31  ;;  %v1913_v39 = vld [vmem:[%s2664_s1 + $0xc] sm:$0xf] (%p2425_p6) }
 0x42c   : > { %2170 = vst.msk [vmem:[%s2664_s1 + $0x14] sm:$0xf] %vm775_vm3, %v1742_v32 }
 0x42d   : > { %1914 = vst [vmem:[%s1890_s4 + $0x30] sm:$0xf] (%p2425_p6), %v1913_v39 }
 0x42f   : > { %v1919_v42 = vld [vmem:[%s2664_s1 + $0x18] sm:$0xf] (%p2425_p6) }
 0x430   : > { %v1853_v33 = vpop.f32.mrf.mxu3  ;;  %1888 = sbr.rel (!%p2425_p6) target bundleno = 1085 (0x43d), region = 147  ;;  %1920 = vst [vmem:[%s1890_s4 + $0x60] sm:$0xf] (%p2425_p6), %v1919_v42 }
 0x431   : > { %vm1856_vm13 = vcmp.ge.f32.partialorder %v1853_v33, 0.0  ;;  %v1857_v34 = vmul.f32 %v1853_v33, %v1454_v11 }
 0x433   : > { %v1858_v35 = vsel %vm1856_vm13, %v1853_v33, %v1857_v34  ;;  %v1917_v41 = vld [vmem:[%s2664_s1 + $0x14] sm:$0xf] (%p2425_p6) }
 0x434   : > { %2180 = vst.msk [vmem:[%s2664_s1 + $0x1c] sm:$0xf] %vm775_vm3, %v1858_v35 }
 0x435   : > { %1918 = vst [vmem:[%s1890_s4 + $0x50] sm:$0xf] %v1917_v41 }
 0x43b   : > { %v1921_v43 = vld [vmem:[%s2664_s1 + $0x1c] sm:$0xf] }
 0x43c   : > { %1922 = vst [vmem:[%s1890_s4 + $0x70] sm:$0xf] %v1921_v43 }
 0x43d PF: > { %p2203_p6 = scmp.ge.s32.totalorder %s2321_s16, 2  ;;  %s1968_s17 = sand.u32 1, %s2309_s13  }
 0x43e   : > { %s1969_s24 = scalar_lea.sflag [#allocation6], %s1968_s17 }
 0x43f   : > { %p2198_p11 = pnand %p2203_p6, %p2431_p10 }
 0x441   : > { %p2199_p12 = pneg %p2198_p11 }
 0x443   : > { %2304 = dma.done.wait (%p2199_p12), %s1969_s24, 512  }
 0x444   : > { %2306 = vsyncadd (%p2199_p12), %s1969_s24, 4294966784  ;;  %p22_p13 = scmp.ge.s32.totalorder %s2407_s19, 6   ;;  %s2740_s13 = smov %s2313_s14 }
 0x445   : > { %s2741_s14 = smov %s2317_s15  ;;  %s2742_s15 = smov %s2419_s22 }
 0x446   : > { %s2743_s16 = smov %s2407_s19  ;;  %24 = sbr.rel (!%p22_p13) target bundleno = 10 (0xa), region = 268 }
 0x44b   :  { %1982 = vsyncpa [#allocation6], 1 }
 0x44c   :  { %1984 = vsyncpa [#allocation6 + $0x1], 1 }
 0x44d   :  { %1985 = vsyncpa [#allocation7], 1 }
 0x44e   :  { %1987 = vsyncpa [#allocation7 + $0x1], 1 }

</bundles_post_ra>
